<compile_context>
chip_gen: v6e
topology: v6e:2x2x1
jax: 0.10.0
libtpu: 0.0.40
codegen_flags: <defaults>
</compile_context>

<pallas_src>
import functools

import jax
import jax.numpy as jnp
from jax import lax
from jax.experimental import pallas as pl
from jax.experimental.pallas import tpu as pltpu

EPS = 1e-3


def _bn_kernel(x_ref, g_ref, b_ref, o_ref, *, inv_count, eps):
    # x_ref: (N, C, HW) f32 ; g_ref/b_ref: (C, 1) f32
    # Single-pass moments over (batch, spatial). Nested single-axis reductions
    # (lane reduce, then leading-axis reduce) keep the lowering simple.
    s1 = jnp.sum(jnp.sum(x_ref[...], axis=2, keepdims=True),
                 axis=0, keepdims=True)                               # (1, C, 1)
    s2 = jnp.sum(jnp.sum(x_ref[...] * x_ref[...], axis=2, keepdims=True),
                 axis=0, keepdims=True)                               # (1, C, 1)

    mean = s1 * inv_count
    # Biased variance (PyTorch training-mode normalization); clamp against
    # catastrophic cancellation when |mean| >> std.
    var = jnp.maximum(s2 * inv_count - mean * mean, 0.0)

    gamma = g_ref[...]                                                # (C, 1)
    beta = b_ref[...]                                                 # (C, 1)

    scale = lax.rsqrt(var + eps) * gamma                              # (1, C, 1)
    shift = beta - mean * scale                                       # (1, C, 1)

    # Folded affine: 2 VALU ops per element. Re-read x from VMEM rather than
    # keeping the full tile live across the reduction.
    o_ref[...] = x_ref[...] * scale + shift


def batchnorm2d(x_nchw, gamma, beta, *, eps=EPS):
    """BatchNorm2d forward with batch statistics (PyTorch training mode), affine=True."""
    N, C, H, W = x_nchw.shape
    HW = H * W
    count = N * HW                          # true element count per channel

    # NCHW -> (N, C, H*W): a reshape only (bitcast) — no transpose, no padding.
    x3d = x_nchw.reshape(N, C, HW).astype(jnp.float32)
    g2d = gamma.astype(jnp.float32).reshape(C, 1)
    b2d = beta.astype(jnp.float32).reshape(C, 1)

    kernel = functools.partial(_bn_kernel, inv_count=1.0 / count, eps=eps)

    out3d = pl.pallas_call(
        kernel,
        out_shape=jax.ShapeDtypeStruct((N, C, HW), jnp.float32),
        grid_spec=pl.GridSpec(
            grid=(1,),
            in_specs=[
                # Block dims equal the full array dims -> legal without (8,128)
                # divisibility; Mosaic masks the ragged 784-lane edge.
                pl.BlockSpec((N, C, HW), lambda i: (0, 0, 0)),
                pl.BlockSpec((C, 1), lambda i: (0, 0)),
                pl.BlockSpec((C, 1), lambda i: (0, 0)),
            ],
            out_specs=pl.BlockSpec((N, C, HW), lambda i: (0, 0, 0)),
        ),
        compiler_params=pltpu.CompilerParams(
            dimension_semantics=("arbitrary",)),
    )(x3d, g2d, b2d)

    return out3d.reshape(N, C, H, W)


if __name__ == "__main__":
    key = jax.random.PRNGKey(0)
    kx, kg, kb = jax.random.split(key, 3)

    # Shape implied by the module spec: x61 = randn([1, 120, 28, 28]).
    N, C, H, W = 1, 120, 28, 28
    x = jax.random.normal(kx, (N, C, H, W), dtype=jnp.float32)
    # PyTorch default init is gamma=1, beta=0; perturb so the affine path is exercised.
    gamma = 1.0 + 0.1 * jax.random.normal(kg, (C,), dtype=jnp.float32)
    beta = 0.1 * jax.random.normal(kb, (C,), dtype=jnp.float32)

    # TODO(synk): running_mean/running_var momentum update (momentum=0.01) is a
    # stateful buffer update that does not affect the training-mode output; not computed.

    out = batchnorm2d(x, gamma, beta)
    jax.block_until_ready(out)

    # Reference (plain JAX, training-mode batch statistics).
    mean = jnp.mean(x, axis=(0, 2, 3), keepdims=True)
    var = jnp.mean((x - mean) ** 2, axis=(0, 2, 3), keepdims=True)
    ref = (x - mean) * lax.rsqrt(var + EPS) * gamma.reshape(1, C, 1, 1) \
          + beta.reshape(1, C, 1, 1)

    assert out.shape == (N, C, H, W)
    err = jnp.max(jnp.abs(out - ref))
    assert err < 1e-4, f"max abs err {err}"

    print("KERNEL_OK")
</pallas_src>

<mosaic_0001>
module attributes {stable_mosaic.version = 11 : i64} {
  func.func @_bn_kernel(%arg0: i32, %arg1: memref<1x120x784xf32, #tpu.memory_space<vmem>>, %arg2: memref<120x1xf32, #tpu.memory_space<vmem>>, %arg3: memref<120x1xf32, #tpu.memory_space<vmem>>, %arg4: memref<1x120x784xf32, #tpu.memory_space<vmem>>) attributes {dimension_semantics = [#tpu.dimension_semantics<arbitrary>], iteration_bounds = array<i64: 1>, scalar_prefetch = 0 : i64, scratch_operands = 0 : i64, tpu.core_type = #tpu.core_type<tc>, window_params = [{pipeline_mode = #tpu.pipeline_mode<synchronous>, transform_indices = @transform_0, window_bounds = array<i64: 1, 120, 784>}, {pipeline_mode = #tpu.pipeline_mode<synchronous>, transform_indices = @transform_1, window_bounds = array<i64: 120, 1>}, {pipeline_mode = #tpu.pipeline_mode<synchronous>, transform_indices = @transform_2, window_bounds = array<i64: 120, 1>}, {pipeline_mode = #tpu.pipeline_mode<synchronous>, transform_indices = @transform_3, window_bounds = array<i64: 1, 120, 784>}]} {
    %c0 = arith.constant 0 : index
    %c0_0 = arith.constant 0 : index
    %c0_1 = arith.constant 0 : index
    %0 = vector.load %arg1[%c0, %c0_0, %c0_1] : memref<1x120x784xf32, #tpu.memory_space<vmem>>, vector<1x120x784xf32>
    %cst = arith.constant dense<0.000000e+00> : vector<1x120xf32>
    %1 = vector.multi_reduction <add>, %0, %cst [2] : vector<1x120x784xf32> to vector<1x120xf32>
    %2 = vector.shape_cast %1 : vector<1x120xf32> to vector<1x120x1xf32>
    %cst_2 = arith.constant dense<0.000000e+00> : vector<120x1xf32>
    %3 = vector.multi_reduction <add>, %2, %cst_2 [0] : vector<1x120x1xf32> to vector<120x1xf32>
    %4 = vector.shape_cast %3 : vector<120x1xf32> to vector<1x120x1xf32>
    %c0_3 = arith.constant 0 : index
    %c0_4 = arith.constant 0 : index
    %c0_5 = arith.constant 0 : index
    %5 = vector.load %arg1[%c0_3, %c0_4, %c0_5] : memref<1x120x784xf32, #tpu.memory_space<vmem>>, vector<1x120x784xf32>
    %c0_6 = arith.constant 0 : index
    %c0_7 = arith.constant 0 : index
    %c0_8 = arith.constant 0 : index
    %6 = vector.load %arg1[%c0_6, %c0_7, %c0_8] : memref<1x120x784xf32, #tpu.memory_space<vmem>>, vector<1x120x784xf32>
    %7 = arith.mulf %5, %6 : vector<1x120x784xf32>
    %cst_9 = arith.constant dense<0.000000e+00> : vector<1x120xf32>
    %8 = vector.multi_reduction <add>, %7, %cst_9 [2] : vector<1x120x784xf32> to vector<1x120xf32>
    %9 = vector.shape_cast %8 : vector<1x120xf32> to vector<1x120x1xf32>
    %cst_10 = arith.constant dense<0.000000e+00> : vector<120x1xf32>
    %10 = vector.multi_reduction <add>, %9, %cst_10 [0] : vector<1x120x1xf32> to vector<120x1xf32>
    %11 = vector.shape_cast %10 : vector<120x1xf32> to vector<1x120x1xf32>
    %cst_11 = arith.constant 0.00127551018 : f32
    %12 = vector.broadcast %cst_11 : f32 to vector<1x120x1xf32>
    %13 = arith.mulf %4, %12 : vector<1x120x1xf32>
    %cst_12 = arith.constant 0.00127551018 : f32
    %14 = vector.broadcast %cst_12 : f32 to vector<1x120x1xf32>
    %15 = arith.mulf %11, %14 : vector<1x120x1xf32>
    %16 = arith.mulf %13, %13 : vector<1x120x1xf32>
    %17 = arith.subf %15, %16 : vector<1x120x1xf32>
    %cst_13 = arith.constant 0.000000e+00 : f32
    %18 = vector.broadcast %cst_13 : f32 to vector<1x120x1xf32>
    %19 = arith.maximumf %17, %18 : vector<1x120x1xf32>
    %c0_14 = arith.constant 0 : index
    %c0_15 = arith.constant 0 : index
    %20 = vector.load %arg2[%c0_14, %c0_15] : memref<120x1xf32, #tpu.memory_space<vmem>>, vector<120x1xf32>
    %c0_16 = arith.constant 0 : index
    %c0_17 = arith.constant 0 : index
    %21 = vector.load %arg3[%c0_16, %c0_17] : memref<120x1xf32, #tpu.memory_space<vmem>>, vector<120x1xf32>
    %cst_18 = arith.constant 1.000000e-03 : f32
    %22 = vector.broadcast %cst_18 : f32 to vector<1x120x1xf32>
    %23 = arith.addf %19, %22 : vector<1x120x1xf32>
    %24 = math.rsqrt %23 : vector<1x120x1xf32>
    %25 = vector.shape_cast %20 : vector<120x1xf32> to vector<1x120x1xf32>
    %26 = arith.mulf %24, %25 : vector<1x120x1xf32>
    %27 = arith.mulf %13, %26 : vector<1x120x1xf32>
    %28 = vector.shape_cast %21 : vector<120x1xf32> to vector<1x120x1xf32>
    %29 = arith.subf %28, %27 : vector<1x120x1xf32>
    %c0_19 = arith.constant 0 : index
    %c0_20 = arith.constant 0 : index
    %c0_21 = arith.constant 0 : index
    %30 = vector.load %arg1[%c0_19, %c0_20, %c0_21] : memref<1x120x784xf32, #tpu.memory_space<vmem>>, vector<1x120x784xf32>
    %31 = vector.broadcast %26 : vector<1x120x1xf32> to vector<1x120x784xf32>
    %32 = arith.mulf %30, %31 : vector<1x120x784xf32>
    %33 = vector.broadcast %29 : vector<1x120x1xf32> to vector<1x120x784xf32>
    %34 = arith.addf %32, %33 : vector<1x120x784xf32>
    %c0_22 = arith.constant 0 : index
    %c0_23 = arith.constant 0 : index
    %c0_24 = arith.constant 0 : index
    %35 = vector.load %arg4[%c0_22, %c0_23, %c0_24] : memref<1x120x784xf32, #tpu.memory_space<vmem>>, vector<1x120x784xf32>
    tpu.vector_store %arg4[%c0_22, %c0_23, %c0_24], %34 {strides = array<i32>} : memref<1x120x784xf32, #tpu.memory_space<vmem>>, vector<1x120x784xf32>,
    return
  }
  func.func @transform_0(%arg0: i32) -> (i32, i32, i32) {
    %c0_i32 = arith.constant 0 : i32
    %c0_i32_0 = arith.constant 0 : i32
    %c0_i32_1 = arith.constant 0 : i32
    %c0_i32_2 = arith.constant 0 : i32
    return %c0_i32, %c0_i32_0, %c0_i32_1 : i32, i32, i32
  }
  func.func @transform_1(%arg0: i32) -> (i32, i32) {
    %c0_i32 = arith.constant 0 : i32
    %c0_i32_0 = arith.constant 0 : i32
    %c0_i32_1 = arith.constant 0 : i32
    return %c0_i32, %c0_i32_0 : i32, i32
  }
  func.func @transform_2(%arg0: i32) -> (i32, i32) {
    %c0_i32 = arith.constant 0 : i32
    %c0_i32_0 = arith.constant 0 : i32
    %c0_i32_1 = arith.constant 0 : i32
    return %c0_i32, %c0_i32_0 : i32, i32
  }
  func.func @transform_3(%arg0: i32) -> (i32, i32, i32) {
    %c0_i32 = arith.constant 0 : i32
    %c0_i32_0 = arith.constant 0 : i32
    %c0_i32_1 = arith.constant 0 : i32
    %c0_i32_2 = arith.constant 0 : i32
    return %c0_i32, %c0_i32_0, %c0_i32_1 : i32, i32, i32
  }
}

</mosaic_0001>

<bundles_post_ra>
// kernel: tpu_custom_call.1
= control target key start
LH: loop header
LB: loop body
LE: loop exit
PB: predicated region body
PF: predicated region fallthrough
CT: control target
= control target key end

     0   :  { %vm124_vm0 = vcmask 130048   ;;  %s3385_s0 = inlined_call_operand.vmem [shape: f32[1,120,784], index: 0, kind: input, shape index: {}]   ;;  %s3386_s1 = inlined_call_operand.vmem [shape: f32[120,1], index: 1, kind: input, shape index: {}]   ;;  %s3387_s2 = inlined_call_operand.vmem [shape: f32[120,1], index: 2, kind: input, shape index: {}]   ;;  %s3388_s3 = inlined_call_operand.vmem [shape: f32[1,120,784], index: 3, kind: output, shape index: {}]  }
   0x1   :  { %v28_v0 = vld [vmem:[%s3385_s0 + $0x70] sm:$0xff]  ;;  %v29_v1 = vld [vmem:[%s3385_s0 + $0x78] sm:$0xff]  ;;  %v30_v2 = vld [vmem:[%s3385_s0 + $0x80] sm:$0xff] }
   0x2   :  { %v31_v3 = vld [vmem:[%s3385_s0 + $0x88] sm:$0xff]  ;;  %v138_v4 = vadd.f32 %v29_v1, %v28_v0  ;;  %v34_v5 = vld [vmem:[%s3385_s0 + $0xa0] sm:$0xff]  ;;  %v284_v8 = vmul.f32 %v28_v0, %v28_v0  ;;  %v285_v9 = vmul.f32 %v29_v1, %v29_v1  ;;  %v286_v10 = vmul.f32 %v30_v2, %v30_v2  ;;  %v32_v11 = vld [vmem:[%s3385_s0 + $0x90] sm:$0xff] }
   0x3   :  { %v14_v6 = vld [vmem:[%s3385_s0] sm:$0xff]  ;;  %v15_v7 = vld [vmem:[%s3385_s0 + $0x8] sm:$0xff]  ;;  %v33_v12 = vld [vmem:[%s3385_s0 + $0x98] sm:$0xff]  ;;  %v287_v17 = vmul.f32 %v31_v3, %v31_v3  ;;  %v1374_v23 = vmul.f32 %v32_v11, %v32_v11  ;;  %v143_v26 = vsel %vm124_vm0, %v34_v5, 0.0  ;;  %v290_v56 = vmul.f32 %v34_v5, %v34_v5 }
   0x4   :  { %v139_v13 = vadd.f32 %v138_v4, %v30_v2  ;;  %v16_v14 = vld [vmem:[%s3385_s0 + $0x10] sm:$0xff]  ;;  %v119_v15 = vadd.f32 %v15_v7, %v14_v6  ;;  %v270_v16 = vmul.f32 %v14_v6, %v14_v6  ;;  %v17_v18 = vld [vmem:[%s3385_s0 + $0x18] sm:$0xff]  ;;  %v1372_v20 = vld [vmem:[%s3385_s0 + $0xa8] sm:$0xff]  ;;  %v271_v21 = vmul.f32 %v15_v7, %v15_v7 }
   0x5   :  { %v20_v19 = vld [vmem:[%s3385_s0 + $0x30] sm:$0xff]  ;;  %v272_v22 = vmul.f32 %v16_v14, %v16_v14  ;;  %v1376_v24 = vmul.f32 %v33_v12, %v33_v12  ;;  %v18_v27 = vld [vmem:[%s3385_s0 + $0x20] sm:$0xff]  ;;  %v1390_v30 = vld [vmem:[%s3385_s0 + $0xb8] sm:$0xff]  ;;  %v273_v31 = vmul.f32 %v17_v18, %v17_v18  ;;  %v393_v45 = vadd.f32 %v285_v9, %v284_v8 }
   0x6   :  { %v140_v25 = vadd.f32 %v139_v13, %v31_v3  ;;  %v120_v28 = vadd.f32 %v119_v15, %v16_v14  ;;  %v1385_v29 = vld [vmem:[%s3385_s0 + $0xb0] sm:$0xff]  ;;  %v19_v32 = vld [vmem:[%s3385_s0 + $0x28] sm:$0xff]  ;;  %v125_v33 = vsel %vm124_vm0, %v20_v19, 0.0  ;;  %v1399_v34 = vld [vmem:[%s3385_s0 + $0xc0] sm:$0xff]  ;;  %v274_v37 = vmul.f32 %v18_v27, %v18_v27 }
   0x7   :  { %v1404_v35 = vld [vmem:[%s3385_s0 + $0xd8] sm:$0xff]  ;;  %v147_v36 = vadd.f32 %v1385_v29, %v1372_v20  ;;  %v375_v38 = vadd.f32 %v271_v21, %v270_v16  ;;  %v1416_v42 = vld [vmem:[%s3385_s0 + $0x40] sm:$0xff]  ;;  %v1421_v43 = vld [vmem:[%s3385_s0 + $0x48] sm:$0xff]  ;;  %v275_v44 = vmul.f32 %v19_v32, %v19_v32  ;;  %v276_v49 = vmul.f32 %v20_v19, %v20_v19 }
   0x8   :  { %v141_v39 = vadd.f32 %v140_v25, %v32_v11  ;;  %v121_v40 = vadd.f32 %v120_v28, %v17_v18  ;;  %v1411_v41 = vld [vmem:[%s3385_s0 + $0x38] sm:$0xff]  ;;  %v1426_v46 = vld [vmem:[%s3385_s0 + $0xc8] sm:$0xff]  ;;  %v1434_v53 = vld [vmem:[%s3385_s0 + $0x50] sm:$0xff]  ;;  %v394_v57 = vadd.f32 %v393_v45, %v286_v10  ;;  %v152_v60 = vsel %vm124_vm0, %v1404_v35, 0.0 }
   0x9   :  { %v148_v47 = vadd.f32 %v147_v36, %v1390_v30  ;;  %v129_v48 = vadd.f32 %v1416_v42, %v1411_v41  ;;  %v376_v50 = vadd.f32 %v375_v38, %v272_v22  ;;  %v1439_v54 = vld [vmem:[%s3385_s0 + $0x118] sm:$0xff]  ;;  %v1444_v55 = vld [vmem:[%s3385_s0 + $0x120] sm:$0xff]  ;;  %v1449_v58 = vld [vmem:[%s3385_s0 + $0xd0] sm:$0xff]  ;;  %v380_v15 = vsel %vm124_vm0, %v276_v49, 0.0 }
   0xa   :  { %v142_v51 = vadd.f32 %v141_v39, %v33_v12  ;;  %v122_v52 = vadd.f32 %v121_v40, %v18_v27  ;;  %v1457_v61 = vld [vmem:[%s3385_s0 + $0x58] sm:$0xff]  ;;  %v1463_v63 = vld [vmem:[%s3385_s0 + $0x128] sm:$0xff]  ;;  %v165_v0 = vadd.f32 %v1444_v55, %v1439_v54  ;;  %v1470_v3 = vld [vmem:[%s3385_s0 + $0x60] sm:$0xff]  ;;  %v395_v8 = vadd.f32 %v394_v57, %v287_v17 }
   0xb   :  { %v149_v59 = vadd.f32 %v148_v47, %v1399_v34  ;;  %v130_v62 = vadd.f32 %v129_v48, %v1421_v43  ;;  %v1475_v4 = vld [vmem:[%s3385_s0 + $0x68] sm:$0xff]  ;;  %v1480_v5 = vld [vmem:[%s3385_s0 + $0x130] sm:$0xff]  ;;  %v1485_v6 = vld [vmem:[%s3385_s0 + $0xe0] sm:$0xff]  ;;  %v377_v7 = vadd.f32 %v376_v50, %v273_v31 }
   0xc   :  { %v144_v1 = vadd.f32 %v143_v26, %v142_v51  ;;  %v123_v2 = vadd.f32 %v122_v52, %v19_v32  ;;  %v1492_v11 = vld [vmem:[%s3385_s0 + $0x138] sm:$0xff]  ;;  %v166_v12 = vadd.f32 %v165_v0, %v1463_v63  ;;  %v1498_v13 = vld [vmem:[%s3385_s0 + $0xe8] sm:$0xff]  ;;  %v1503_v14 = vld [vmem:[%s3385_s0 + $0xf0] sm:$0xff]  ;;  %v396_v25 = vadd.f32 %v395_v8, %v1374_v23 }
   0xd   :  { %v150_v9 = vadd.f32 %v149_v59, %v1426_v46  ;;  %v131_v10 = vadd.f32 %v130_v62, %v1434_v53  ;;  %v1509_v17 = vld [vmem:[%s3385_s0 + $0x140] sm:$0xff]  ;;  %v1514_v18 = vld [vmem:[%s3385_s0 + $0x148] sm:$0xff]  ;;  %v1519_v19 = vld [vmem:[%s3385_s0 + $0xf8] sm:$0xff]  ;;  %v156_v21 = vadd.f32 %v1498_v13, %v1485_v6  ;;  %v378_v22 = vadd.f32 %v377_v7, %v274_v37 }
   0xe   :  { %145 = vadd.xlane.f32.xlu1 %v144_v1  ;;  %v126_v16 = vadd.f32 %v125_v33, %v123_v2  ;;  %v167_v28 = vadd.f32 %v166_v12, %v1480_v5  ;;  %v1530_v31 = vld [vmem:[%s3385_s0 + $0x188] sm:$0xff]  ;;  %v1535_v32 = vld [vmem:[%s3385_s0 + $0x190] sm:$0xff]  ;;  %v1540_v23 = vld [vmem:[%s3385_s0 + $0x198] sm:$0xff]  ;;  %v398_v33 = vsel %vm124_vm0, %v290_v56, 0.0  ;;  %v134_v36 = vsel %vm124_vm0, %v1475_v4, 0.0 }
   0xf   :  { %v151_v26 = vadd.f32 %v150_v9, %v1449_v58  ;;  %v132_v27 = vadd.f32 %v131_v10, %v1457_v61  ;;  %3428 = vst [vmem:[#allocation2_spill] sm:$0xff] %v1530_v31  ;;  %3429 = vst [vmem:[#allocation3_spill] sm:$0xff] %v1535_v32  ;;  %v1548_v37 = vld [vmem:[%s3385_s0 + $0x100] sm:$0xff]  ;;  %v1553_v38 = vld [vmem:[%s3385_s0 + $0x110] sm:$0xff]  ;;  %v157_v39 = vadd.f32 %v156_v21, %v1503_v14  ;;  %v170_v57 = vsel %vm124_vm0, %v1514_v18, 0.0 }
  0x10   :  { %3430 = vst [vmem:[#allocation4_spill] sm:$0xff] %v1540_v23  ;;  %127 = vadd.xlane.f32.xlu0 %v126_v16  ;;  %v1559_v40 = vld [vmem:[%s3385_s0 + $0x1a0] sm:$0xff]  ;;  %v183_v45 = vadd.f32 %v1535_v32, %v1530_v31  ;;  %v379_v47 = vadd.f32 %v378_v22, %v275_v44  ;;  %v168_v50 = vadd.f32 %v167_v28, %v1492_v11  ;;  %v1568_v51 = vld [vmem:[%s3385_s0 + $0x1b8] sm:$0xff]  ;;  %v1573_v52 = vld [vmem:[%s3385_s0 + $0x150] sm:$0xff]  ;;  %v161_v8 = vsel %vm124_vm0, %v1553_v38, 0.0 }
  0x11   :  { %3431 = vst [vmem:[#allocation5_spill] sm:$0xff] %v1559_v40  ;;  %v153_v48 = vadd.f32 %v152_v60, %v151_v26  ;;  %v133_v49 = vadd.f32 %v132_v27, %v1470_v3  ;;  %3432 = vst [vmem:[#allocation6_spill] sm:$0xff] %v1568_v51  ;;  %v1578_v56 = vld [vmem:[%s3385_s0 + $0x158] sm:$0xff]  ;;  %v397_v44 = vadd.f32 %v396_v25, %v1376_v24  ;;  %v1586_v59 = vld [vmem:[%s3385_s0 + $0x108] sm:$0xff]  ;;  %v188_v25 = vsel %vm124_vm0, %v1568_v51, 0.0 }
  0x12   :  { %v158_v60 = vadd.f32 %v157_v39, %v1519_v19  ;;  %v1592_v62 = vld [vmem:[%s3385_s0 + $0x1a8] sm:$0xff]  ;;  %v184_v0 = vadd.f32 %v183_v45, %v1540_v23  ;;  %v1598_v24 = vld [vmem:[%s3385_s0 + $0x160] sm:$0xff]  ;;  %v174_v1 = vadd.f32 %v1578_v56, %v1573_v52  ;;  %v169_v7 = vadd.f32 %v168_v50, %v1509_v17  ;;  %v1608_v9 = vld [vmem:[%s3385_s0 + $0x1b0] sm:$0xff] }
  0x13   :  { %3433 = vst [vmem:[#allocation7_spill] sm:$0xff] %v1592_v62  ;;  %154 = vadd.xlane.f32.xlu1 %v153_v48  ;;  %v135_v2 = vadd.f32 %v134_v36, %v133_v49  ;;  %3434 = vst [vmem:[#allocation8_spill] sm:$0xff] %v1608_v9  ;;  %v1613_v10 = vld [vmem:[%s3385_s0 + $0x168] sm:$0xff]  ;;  %v1618_v12 = vld [vmem:[%s3385_s0 + $0x1f8] sm:$0xff]  ;;  %v277_v16 = vmul.f32 %v1411_v41, %v1411_v41  ;;  %v1659_v50 = vadd.f32 %v380_v15, %v379_v47 }
  0x14   :  { %3435 = vst [vmem:[#allocation9_spill] sm:$0xff] %v1618_v12  ;;  %v159_v21 = vadd.f32 %v158_v60, %v1548_v37  ;;  %v185_v22 = vadd.f32 %v184_v0, %v1559_v40  ;;  %v1629_v26 = vld [vmem:[%s3385_s0 + $0x180] sm:$0xff]  ;;  %v175_v27 = vadd.f32 %v174_v1, %v1598_v24  ;;  %v1640_v41 = vld [vmem:[%s3385_s0 + $0x208] sm:$0xff]  ;;  %v171_v36 = vadd.f32 %v170_v57, %v169_v7  ;;  %v1645_v39 = vld [vmem:[%s3385_s0 + $0x170] sm:$0xff] }
  0x15   :  { %v1635_v28 = vld [vmem:[%s3385_s0 + $0x200] sm:$0xff]  ;;  %3437 = vst [vmem:[#allocation11_spill] sm:$0xff] %v1640_v41  ;;  %136 = vadd.xlane.f32.xlu0 %v135_v2  ;;  %v1650_v45 = vld [vmem:[%s3385_s0 + $0x210] sm:$0xff]  ;;  %v1655_v48 = vld [vmem:[%s3385_s0 + $0x228] sm:$0xff]  ;;  %v1661_v57 = vadd.f32 %v398_v33, %v397_v44  ;;  %v278_v33 = vmul.f32 %v1416_v42, %v1416_v42  ;;  %v179_v44 = vsel %vm124_vm0, %v1629_v26, 0.0  ;;  %v279_v42 = vmul.f32 %v1421_v43, %v1421_v43 }
  0x16   :  { %3436 = vst [vmem:[#allocation10_spill] sm:$0xff] %v1635_v28  ;;  %3438 = vst [vmem:[#allocation12_spill] sm:$0xff] %v1650_v45  ;;  %v201_v49 = vadd.f32 %v1635_v28, %v1618_v12  ;;  %v160_v60 = vadd.f32 %v159_v21, %v1586_v59  ;;  %v186_v0 = vadd.f32 %v185_v22, %v1592_v62  ;;  %v1669_v2 = vld [vmem:[%s3385_s0 + $0x1c0] sm:$0xff]  ;;  %v1674_v7 = vld [vmem:[%s3385_s0 + $0x1c8] sm:$0xff]  ;;  %v206_v62 = vsel %vm124_vm0, %v1655_v48, 0.0 }
  0x17   :  { %3439 = vst [vmem:[#allocation13_spill] sm:$0xff] %v1655_v48  ;;  %v176_v1 = vadd.f32 %v175_v27, %v1613_v10  ;;  %v1679_v15 = vld [vmem:[%s3385_s0 + $0x1d0] sm:$0xff]  ;;  %172 = vadd.xlane.f32.xlu1 %v171_v36  ;;  %v1686_v47 = vld [vmem:[%s3385_s0 + $0x178] sm:$0xff]  ;;  %v192_v27 = vadd.f32 %v1674_v7, %v1669_v2  ;;  %v1744_v40 = vld [vmem:[%s3385_s0 + $0x1e8] sm:$0xff] }
  0x18   :  { %v1693_v21 = vld [vmem:[%s3385_s0 + $0x218] sm:$0xff]  ;;  %v202_v22 = vadd.f32 %v201_v49, %v1640_v41  ;;  %v162_v36 = vadd.f32 %v161_v8, %v160_v60  ;;  %v187_v28 = vadd.f32 %v186_v0, %v1608_v9  ;;  %v1712_v49 = vld [vmem:[%s3385_s0 + $0x268] sm:$0xff]  ;;  %v1717_v43 = vld [vmem:[%s3385_s0 + $0x270] sm:$0xff]  ;;  %v280_v9 = vmul.f32 %v1434_v53, %v1434_v53 }
  0x19   :  { %3440 = vst [vmem:[#allocation14_spill] sm:$0xff] %v1693_v21  ;;  %v177_v12 = vadd.f32 %v176_v1, %v1645_v39  ;;  %v1707_v51 = vld [vmem:[%s3385_s0 + $0x1d8] sm:$0xff]  ;;  %3442 = vst [vmem:[#allocation16_spill] sm:$0xff] %v1712_v49  ;;  %v1722_v8 = vld [vmem:[%s3385_s0 + $0x220] sm:$0xff]  ;;  %v193_v1 = vadd.f32 %v192_v27, %v1679_v15  ;;  %v219_v41 = vadd.f32 %v1717_v43, %v1712_v49 }
  0x1a   :  { %3441 = vst [vmem:[#allocation15_spill] sm:$0xff] %v1707_v51  ;;  %3443 = vst [vmem:[#allocation17_spill] sm:$0xff] %v1717_v43  ;;  %v203_v60 = vadd.f32 %v202_v22, %v1650_v45  ;;  %v1728_v0 = vld [vmem:[%s3385_s0 + $0x1e0] sm:$0xff]  ;;  %v1734_v48 = vld [vmem:[%s3385_s0 + $0x278] sm:$0xff]  ;;  %163 = vadd.xlane.f32.xlu0 %v162_v36  ;;  %v189_v22 = vadd.f32 %v188_v25, %v187_v28  ;;  %v384_v25 = vadd.f32 %v278_v33, %v277_v16 }
  0x1b   :  { %3444 = vst [vmem:[#allocation18_spill] sm:$0xff] %v1722_v8  ;;  %3445 = vst [vmem:[#allocation19_spill] sm:$0xff] %v1728_v0  ;;  %v178_v45 = vadd.f32 %v177_v12, %v1686_v47  ;;  %v1749_v27 = vld [vmem:[%s3385_s0 + $0x1f0] sm:$0xff]  ;;  %v1754_v43 = vld [vmem:[%s3385_s0 + $0x280] sm:$0xff]  ;;  %v281_v12 = vmul.f32 %v1457_v61, %v1457_v61  ;;  %v194_v36 = vadd.f32 %v193_v1, %v1707_v51 }
  0x1c   :  { %3446 = vst [vmem:[#allocation20_spill] sm:$0xff] %v1734_v48  ;;  %3447 = vst [vmem:[#allocation21_spill] sm:$0xff] %v1754_v43  ;;  %v1759_v53 = vld [vmem:[%s3385_s0 + $0x230] sm:$0xff]  ;;  %v204_v28 = vadd.f32 %v203_v60, %v1693_v21  ;;  %v1768_v49 = vld [vmem:[%s3385_s0 + $0x298] sm:$0xff]  ;;  %v220_v23 = vadd.f32 %v219_v41, %v1734_v48  ;;  %v283_v16 = vmul.f32 %v1475_v4, %v1475_v4  ;;  %190 = vadd.xlane.f32.xlu1 %v189_v22 }
  0x1d   :  { %3448 = vst [vmem:[#allocation22_spill] sm:$0xff] %v1759_v53  ;;  %3449 = vst [vmem:[#allocation23_spill] sm:$0xff] %v1768_v49  ;;  %v1774_v32 = vld [vmem:[%s3385_s0 + $0x238] sm:$0xff]  ;;  %v1779_v61 = vld [vmem:[%s3385_s0 + $0x240] sm:$0xff]  ;;  %v180_v33 = vadd.f32 %v179_v44, %v178_v45  ;;  %v282_v45 = vmul.f32 %v1470_v3, %v1470_v3  ;;  %v385_v44 = vadd.f32 %v384_v25, %v279_v42  ;;  %v197_v21 = vsel %vm124_vm0, %v1749_v27, 0.0 }
  0x1e   :  { %3450 = vst [vmem:[#allocation24_spill] sm:$0xff] %v1774_v32  ;;  %v1786_v60 = vld [vmem:[%s3385_s0 + $0x288] sm:$0xff]  ;;  %v1796_v1 = vld [vmem:[%s3385_s0 + $0x260] sm:$0xff]  ;;  %v210_v4 = vadd.f32 %v1774_v32, %v1759_v53  ;;  %v205_v22 = vadd.f32 %v204_v28, %v1722_v8  ;;  %v195_v48 = vadd.f32 %v194_v36, %v1728_v0  ;;  %v221_v31 = vadd.f32 %v220_v23, %v1754_v43  ;;  %v1810_v51 = vld [vmem:[%s3385_s0 + $0x2d8] sm:$0xff] }
  0x1f   :  { %3451 = vst [vmem:[#allocation25_spill] sm:$0xff] %v1786_v60  ;;  %v1791_v41 = vld [vmem:[%s3385_s0 + $0x248] sm:$0xff]  ;;  %3452 = vst [vmem:[#allocation26_spill] sm:$0xff] %v1796_v1  ;;  %v1815_v32 = vld [vmem:[%s3385_s0 + $0x2e0] sm:$0xff]  ;;  %181 = vadd.xlane.f32.xlu0 %v180_v33  ;;  %v224_v42 = vsel %vm124_vm0, %v1768_v49, 0.0  ;;  %v386_v43 = vadd.f32 %v385_v44, %v280_v9 }
  0x20   :  { %3453 = vst [vmem:[#allocation27_spill] sm:$0xff] %v1810_v51  ;;  %3454 = vst [vmem:[#allocation28_spill] sm:$0xff] %v1815_v32  ;;  %v1820_v3 = vld [vmem:[%s3385_s0 + $0x2e8] sm:$0xff]  ;;  %v1825_v23 = vld [vmem:[%s3385_s0 + $0x290] sm:$0xff]  ;;  %v211_v28 = vadd.f32 %v210_v4, %v1779_v61  ;;  %v237_v36 = vadd.f32 %v1815_v32, %v1810_v51  ;;  %v207_v33 = vadd.f32 %v206_v62, %v205_v22  ;;  %v389_v62 = vsel %vm124_vm0, %v283_v16, 0.0 }
  0x21   :  { %3455 = vst [vmem:[#allocation29_spill] sm:$0xff] %v1820_v3  ;;  %3456 = vst [vmem:[#allocation30_spill] sm:$0xff] %v1825_v23  ;;  %v1832_v25 = vld [vmem:[%s3385_s0 + $0x250] sm:$0xff]  ;;  %v196_v8 = vadd.f32 %v195_v48, %v1744_v40  ;;  %v222_v53 = vadd.f32 %v221_v31, %v1786_v60  ;;  %v1847_v0 = vld [vmem:[%s3385_s0 + $0x2a0] sm:$0xff]  ;;  %v215_v48 = vsel %vm124_vm0, %v1796_v1, 0.0  ;;  %v300_v1 = vmul.f32 %v1503_v14, %v1503_v14 }
  0x22   :  { %v1842_v49 = vld [vmem:[%s3385_s0 + $0x2f0] sm:$0xff]  ;;  %3458 = vst [vmem:[#allocation32_spill] sm:$0xff] %v1847_v0  ;;  %v1852_v4 = vld [vmem:[%s3385_s0 + $0x2a8] sm:$0xff]  ;;  %v1858_v31 = vld [vmem:[%s3385_s0 + $0x258] sm:$0xff]  ;;  %v212_v9 = vadd.f32 %v211_v28, %v1791_v41  ;;  %v238_v22 = vadd.f32 %v237_v36, %v1820_v3  ;;  %208 = vadd.xlane.f32.xlu1 %v207_v33 }
  0x23   :  { %3457 = vst [vmem:[#allocation31_spill] sm:$0xff] %v1842_v49  ;;  %3459 = vst [vmem:[#allocation33_spill] sm:$0xff] %v1852_v4  ;;  %v1866_v44 = vld [vmem:[%s3385_s0 + $0x308] sm:$0xff]  ;;  %v1872_v16 = vld [vmem:[%s3385_s0 + $0x2b0] sm:$0xff]  ;;  %v228_v32 = vadd.f32 %v1852_v4, %v1847_v0  ;;  %v198_v28 = vadd.f32 %v197_v21, %v196_v8  ;;  %v223_v51 = vadd.f32 %v222_v53, %v1825_v23 }
  0x24   :  { %3460 = vst [vmem:[#allocation34_spill] sm:$0xff] %v1866_v44  ;;  %3461 = vst [vmem:[#allocation35_spill] sm:$0xff] %v1872_v16  ;;  %v1880_v60 = vld [vmem:[%s3385_s0 + $0x2f8] sm:$0xff]  ;;  %v1890_v3 = vld [vmem:[%s3385_s0 + $0x310] sm:$0xff]  ;;  %v387_v4 = vadd.f32 %v386_v43, %v281_v12  ;;  %v298_v21 = vmul.f32 %v1485_v6, %v1485_v6  ;;  %v213_v8 = vadd.f32 %v212_v9, %v1832_v25 }
  0x25   :  { %3462 = vst [vmem:[#allocation36_spill] sm:$0xff] %v1880_v60  ;;  %v1885_v36 = vld [vmem:[%s3385_s0 + $0x2b8] sm:$0xff]  ;;  %3463 = vst [vmem:[#allocation37_spill] sm:$0xff] %v1890_v3  ;;  %v239_v53 = vadd.f32 %v238_v22, %v1842_v49  ;;  %v1899_v33 = vld [vmem:[%s3385_s0 + $0x2d0] sm:$0xff]  ;;  %v229_v23 = vadd.f32 %v228_v32, %v1872_v16  ;;  %v299_v43 = vmul.f32 %v1498_v13, %v1498_v13  ;;  %199 = vadd.xlane.f32.xlu0 %v198_v28 }
  0x26   :  { %3464 = vst [vmem:[#allocation38_spill] sm:$0xff] %v1899_v33  ;;  %v1905_v0 = vld [vmem:[%s3385_s0 + $0x318] sm:$0xff]  ;;  %v1910_v6 = vld [vmem:[%s3385_s0 + $0x320] sm:$0xff]  ;;  %v225_v12 = vadd.f32 %v224_v42, %v223_v51  ;;  %v242_v32 = vsel %vm124_vm0, %v1866_v44, 0.0  ;;  %v388_v51 = vadd.f32 %v387_v4, %v282_v45  ;;  %v214_v42 = vadd.f32 %v213_v8, %v1858_v31  ;;  %v1939_v16 = vld [vmem:[%s3385_s0 + $0x328] sm:$0xff] }
  0x27   :  { %3465 = vst [vmem:[#allocation39_spill] sm:$0xff] %v1905_v0  ;;  %v1917_v9 = vld [vmem:[%s3385_s0 + $0x300] sm:$0xff]  ;;  %v246_v13 = vadd.f32 %v1905_v0, %v1890_v3  ;;  %v240_v28 = vadd.f32 %v239_v53, %v1880_v60  ;;  %v230_v44 = vadd.f32 %v229_v23, %v1885_v36  ;;  %v1946_v0 = vld [vmem:[%s3385_s0 + $0x2c8] sm:$0xff]  ;;  %v233_v45 = vsel %vm124_vm0, %v1899_v33, 0.0  ;;  %v1960_v60 = vld [vmem:[%s3385_s0 + $0x330] sm:$0xff] }
  0x28   :  { %v1924_v22 = vld [vmem:[%s3385_s0 + $0x2c0] sm:$0xff]  ;;  %226 = vadd.xlane.f32.xlu1 %v225_v12  ;;  %v301_v8 = vmul.f32 %v1519_v19, %v1519_v19  ;;  %v216_v53 = vadd.f32 %v215_v48, %v214_v42  ;;  %v390_v3 = vadd.f32 %v389_v62, %v388_v51  ;;  %v292_v19 = vmul.f32 %v1385_v29, %v1385_v29 }
  0x29   :  { %v1929_v49 = vld [vmem:[%s3385_s0 + $0x340] sm:$0xff]  ;;  %v247_v4 = vadd.f32 %v246_v13, %v1910_v6  ;;  %v241_v14 = vadd.f32 %v240_v28, %v1917_v9  ;;  %v231_v12 = vadd.f32 %v230_v44, %v1924_v22  ;;  %v411_v13 = vadd.f32 %v299_v43, %v298_v21  ;;  %v1971_v44 = vld [vmem:[%s3385_s0 + $0x338] sm:$0xff] }
  0x2a   :  { %3466 = vst [vmem:[#allocation40_spill] sm:$0xff] %v1929_v49  ;;  %v251_v23 = vsel %vm124_vm0, %v1929_v49, 0.0  ;;  %v291_v49 = vmul.f32 %v1372_v20, %v1372_v20  ;;  %217 = vadd.xlane.f32.xlu0 %v216_v53  ;;  %v304_v62 = vmul.f32 %v1553_v38, %v1553_v38  ;;  %v293_v21 = vmul.f32 %v1390_v30, %v1390_v30 }
  0x2b   :  { %v248_v33 = vadd.f32 %v247_v4, %v1939_v16  ;;  %v243_v48 = vadd.f32 %v242_v32, %v241_v14  ;;  %v232_v42 = vadd.f32 %v231_v12, %v1946_v0  ;;  %v302_v29 = vmul.f32 %v1548_v37, %v1548_v37 }
  0x2c   :  { %v303_v43 = vmul.f32 %v1586_v59, %v1586_v59  ;;  %v412_v32 = vadd.f32 %v411_v13, %v300_v1  ;;  %v294_v28 = vmul.f32 %v1399_v34, %v1399_v34  ;;  %v297_v38 = vmul.f32 %v1404_v35, %v1404_v35 }
  0x2d   :  { %v249_v20 = vadd.f32 %v248_v33, %v1960_v60  ;;  %244 = vadd.xlane.f32.xlu1 %v243_v48  ;;  %v234_v51 = vadd.f32 %v233_v45, %v232_v42  ;;  %v402_v4 = vadd.f32 %v292_v19, %v291_v49  ;;  %v312_v33 = vmul.f32 %v1573_v52, %v1573_v52 }
  0x2e   :  { %v413_v53 = vadd.f32 %v412_v32, %v301_v8  ;;  %v313_v37 = vmul.f32 %v1578_v56, %v1578_v56  ;;  %v416_v59 = vsel %vm124_vm0, %v304_v62, 0.0  ;;  %v295_v1 = vmul.f32 %v1426_v46, %v1426_v46 }
  0x2f   :  { %v250_v30 = vadd.f32 %v249_v20, %v1971_v44  ;;  %235 = vadd.xlane.f32.xlu0 %v234_v51  ;;  %v403_v34 = vadd.f32 %v402_v4, %v293_v21  ;;  %v314_v35 = vmul.f32 %v1598_v24, %v1598_v24  ;;  %v296_v8 = vmul.f32 %v1449_v58, %v1449_v58  ;;  %v3467_v51 = vld [vmem:[#allocation15_spill] sm:$0xff] }
  0x30   :  { %v414_v45 = vadd.f32 %v413_v53, %v302_v29  ;;  %v407_v52 = vsel %vm124_vm0, %v297_v38, 0.0  ;;  %v315_v14 = vmul.f32 %v1613_v10, %v1613_v10  ;;  %v429_v12 = vadd.f32 %v313_v37, %v312_v33  ;;  %v3468_v38 = vld [vmem:[#allocation2_spill] sm:$0xff]  ;;  %v3470_v53 = vld [vmem:[#allocation4_spill] sm:$0xff]  ;;  %v3471_v37 = vld [vmem:[#allocation19_spill] sm:$0xff] }
  0x31   :  { %v252_v49 = vadd.f32 %v251_v23, %v250_v30  ;;  %382 = vadd.xlane.f32.xlu1 %v1659_v50  ;;  %v404_v56 = vadd.f32 %v403_v34, %v294_v28  ;;  %v305_v46 = vmul.f32 %v1439_v54, %v1439_v54  ;;  %v318_v24 = vmul.f32 %v1629_v26, %v1629_v26 }
  0x32   :  { %v415_v13 = vadd.f32 %v414_v45, %v303_v43  ;;  %v306_v23 = vmul.f32 %v1444_v55, %v1444_v55  ;;  %v307_v58 = vmul.f32 %v1463_v63, %v1463_v63  ;;  %v316_v19 = vmul.f32 %v1645_v39, %v1645_v39 }
  0x33   :  { %253 = vadd.xlane.f32.xlu0 %v252_v49  ;;  %v405_v50 = vadd.f32 %v404_v56, %v295_v1  ;;  %v317_v10 = vmul.f32 %v1686_v47, %v1686_v47  ;;  %v430_v48 = vadd.f32 %v429_v12, %v314_v35  ;;  %v308_v42 = vmul.f32 %v1480_v5, %v1480_v5  ;;  %v3472_v49 = vld [vmem:[#allocation5_spill] sm:$0xff]  ;;  %v3474_v12 = vld [vmem:[#allocation22_spill] sm:$0xff] }
  0x34   :  { %v417_v54 = vadd.f32 %v416_v59, %v415_v13  ;;  %v311_v26 = vmul.f32 %v1514_v18, %v1514_v18  ;;  %v420_v55 = vadd.f32 %v306_v23, %v305_v46  ;;  %v326_v21 = vmul.f32 %v1669_v2, %v1669_v2  ;;  %v3475_v13 = vld [vmem:[#allocation24_spill] sm:$0xff]  ;;  %v3476_v23 = vld [vmem:[#allocation7_spill] sm:$0xff] }
  0x35   :  { %400 = vadd.xlane.f32.xlu1 %v1661_v57  ;;  %v406_v63 = vadd.f32 %v405_v50, %v296_v8  ;;  %v431_v62 = vadd.f32 %v430_v48, %v315_v14  ;;  %v327_v39 = vmul.f32 %v1674_v7, %v1674_v7  ;;  %v434_v47 = vsel %vm124_vm0, %v318_v24, 0.0 }
  0x36   :  { %v309_v20 = vmul.f32 %v1492_v11, %v1492_v11  ;;  %v421_v5 = vadd.f32 %v420_v55, %v307_v58  ;;  %v328_v18 = vmul.f32 %v1679_v15, %v1679_v15  ;;  %v310_v43 = vmul.f32 %v1509_v17, %v1509_v17 }
  0x37   :  { %391 = vadd.xlane.f32.xlu0 %v390_v3  ;;  %v408_v29 = vadd.f32 %v407_v52, %v406_v63  ;;  %v432_v57 = vadd.f32 %v431_v62, %v316_v19  ;;  %v425_v2 = vsel %vm124_vm0, %v311_v26, 0.0  ;;  %v329_v7 = vmul.f32 %v3467_v51, %v3467_v51  ;;  %v3469_v3 = vld [vmem:[#allocation3_spill] sm:$0xff] }
  0x38   :  { %v422_v32 = vadd.f32 %v421_v5, %v308_v42  ;;  %v447_v28 = vadd.f32 %v327_v39, %v326_v21  ;;  %v319_v11 = vmul.f32 %v3468_v38, %v3468_v38  ;;  %v332_v15 = vmul.f32 %v1749_v27, %v1749_v27  ;;  %v3473_v27 = vld [vmem:[#allocation6_spill] sm:$0xff]  ;;  %v3478_v21 = vld [vmem:[#allocation9_spill] sm:$0xff] }
  0x39   :  { %418 = vadd.xlane.f32.xlu1 %v417_v54  ;;  %v433_v4 = vadd.f32 %v432_v57, %v317_v10  ;;  %v320_v30 = vmul.f32 %v3469_v3, %v3469_v3  ;;  %v321_v17 = vmul.f32 %v3470_v53, %v3470_v53  ;;  %v330_v59 = vmul.f32 %v3471_v37, %v3471_v37  ;;  %v3477_v54 = vld [vmem:[#allocation8_spill] sm:$0xff]  ;;  %v3483_v38 = vld [vmem:[#allocation13_spill] sm:$0xff] }
  0x3a   :  { %v423_v33 = vadd.f32 %v422_v32, %v309_v20  ;;  %v331_v1 = vmul.f32 %v1744_v40, %v1744_v40  ;;  %v448_v34 = vadd.f32 %v447_v28, %v328_v18  ;;  %v322_v45 = vmul.f32 %v3472_v49, %v3472_v49  ;;  %v3479_v20 = vld [vmem:[#allocation10_spill] sm:$0xff]  ;;  %v3480_v18 = vld [vmem:[#allocation11_spill] sm:$0xff]  ;;  %v3484_v3 = vld [vmem:[#allocation32_spill] sm:$0xff] }
  0x3b   :  { %409 = vadd.xlane.f32.xlu0 %v408_v29  ;;  %v435_v35 = vadd.f32 %v434_v47, %v433_v4  ;;  %v325_v8 = vmul.f32 %v3473_v27, %v3473_v27  ;;  %v438_v52 = vadd.f32 %v320_v30, %v319_v11  ;;  %v340_v46 = vmul.f32 %v3474_v12, %v3474_v12  ;;  %v3485_v53 = vld [vmem:[#allocation33_spill] sm:$0xff] }
  0x3c   :  { %v424_v56 = vadd.f32 %v423_v33, %v310_v43  ;;  %v449_v14 = vadd.f32 %v448_v34, %v329_v7  ;;  %v341_v24 = vmul.f32 %v3475_v13, %v3475_v13  ;;  %v452_v40 = vsel %vm124_vm0, %v332_v15, 0.0  ;;  %v3482_v7 = vld [vmem:[#allocation12_spill] sm:$0xff] }
  0x3d   :  { %436 = vadd.xlane.f32.xlu1 %v435_v35  ;;  %v323_v58 = vmul.f32 %v3476_v23, %v3476_v23  ;;  %v439_v50 = vadd.f32 %v438_v52, %v321_v17  ;;  %v342_v19 = vmul.f32 %v1779_v61, %v1779_v61  ;;  %v324_v42 = vmul.f32 %v3477_v54, %v3477_v54  ;;  %v3486_v17 = vld [vmem:[#allocation14_spill] sm:$0xff]  ;;  %v3491_v23 = vld [vmem:[#allocation20_spill] sm:$0xff] }
  0x3e   :  { %v426_v10 = vadd.f32 %v425_v2, %v424_v56  ;;  %v450_v48 = vadd.f32 %v449_v14, %v330_v59  ;;  %v443_v26 = vsel %vm124_vm0, %v325_v8, 0.0  ;;  %v343_v63 = vmul.f32 %v1791_v41, %v1791_v41  ;;  %v3481_v41 = vld [vmem:[#allocation26_spill] sm:$0xff]  ;;  %v3487_v59 = vld [vmem:[#allocation35_spill] sm:$0xff]  ;;  %v3489_v14 = vld [vmem:[#allocation16_spill] sm:$0xff] }
  0x3f   :  { %v440_v55 = vadd.f32 %v439_v50, %v322_v45  ;;  %v465_v62 = vadd.f32 %v341_v24, %v340_v46  ;;  %v333_v39 = vmul.f32 %v3478_v21, %v3478_v21  ;;  %v344_v61 = vmul.f32 %v1832_v25, %v1832_v25  ;;  %v3488_v45 = vld [vmem:[#allocation18_spill] sm:$0xff]  ;;  %v3490_v24 = vld [vmem:[#allocation17_spill] sm:$0xff] }
  0x40   :  { %427 = vadd.xlane.f32.xlu0 %v426_v10  ;;  %v451_v47 = vadd.f32 %v450_v48, %v331_v1  ;;  %v334_v5 = vmul.f32 %v3479_v20, %v3479_v20  ;;  %v335_v29 = vmul.f32 %v3480_v18, %v3480_v18  ;;  %v345_v43 = vmul.f32 %v1858_v31, %v1858_v31  ;;  %v3492_v10 = vld [vmem:[#allocation38_spill] sm:$0xff]  ;;  %v3496_v20 = vld [vmem:[#allocation25_spill] sm:$0xff]  ;;  %v3497_v18 = vld [vmem:[#allocation23_spill] sm:$0xff] }
  0x41   :  { %v441_v57 = vadd.f32 %v440_v55, %v323_v58  ;;  %v346_v2 = vmul.f32 %v3481_v41, %v3481_v41  ;;  %v466_v32 = vadd.f32 %v465_v62, %v342_v19  ;;  %v336_v28 = vmul.f32 %v3482_v7, %v3482_v7 }
  0x42   :  { %v453_v51 = vadd.f32 %v452_v40, %v451_v47  ;;  %v339_v25 = vmul.f32 %v3483_v38, %v3483_v38  ;;  %v456_v11 = vadd.f32 %v334_v5, %v333_v39  ;;  %v354_v30 = vmul.f32 %v3484_v3, %v3484_v3  ;;  %v3494_v39 = vld [vmem:[#allocation37_spill] sm:$0xff] }
  0x43   :  { %v442_v4 = vadd.f32 %v441_v57, %v324_v42  ;;  %v467_v15 = vadd.f32 %v466_v32, %v343_v63  ;;  %v355_v31 = vmul.f32 %v3485_v53, %v3485_v53  ;;  %v337_v33 = vmul.f32 %v3486_v17, %v3486_v17  ;;  %v3498_v32 = vld [vmem:[#allocation30_spill] sm:$0xff]  ;;  %v3501_v3 = vld [vmem:[#allocation29_spill] sm:$0xff] }
  0x44   :  { %454 = vadd.xlane.f32.xlu1 %v453_v51  ;;  %v457_v37 = vadd.f32 %v456_v11, %v335_v29  ;;  %v356_v1 = vmul.f32 %v3487_v59, %v3487_v59  ;;  %v470_v49 = vsel %vm124_vm0, %v346_v2, 0.0  ;;  %v338_v27 = vmul.f32 %v3488_v45, %v3488_v45 }
  0x45   :  { %v444_v34 = vadd.f32 %v443_v26, %v442_v4  ;;  %v468_v35 = vadd.f32 %v467_v15, %v344_v61  ;;  %v357_v52 = vmul.f32 %v1885_v36, %v1885_v36  ;;  %v483_v56 = vadd.f32 %v355_v31, %v354_v30  ;;  %v3493_v26 = vld [vmem:[#allocation21_spill] sm:$0xff]  ;;  %v3495_v61 = vld [vmem:[#allocation39_spill] sm:$0xff]  ;;  %v3500_v15 = vld [vmem:[#allocation28_spill] sm:$0xff] }
  0x46   :  { %v458_v8 = vadd.f32 %v457_v37, %v336_v28  ;;  %v347_v12 = vmul.f32 %v3489_v14, %v3489_v14  ;;  %v461_v13 = vsel %vm124_vm0, %v339_v25, 0.0  ;;  %v348_v40 = vmul.f32 %v3490_v24, %v3490_v24  ;;  %v3499_v25 = vld [vmem:[#allocation27_spill] sm:$0xff]  ;;  %v3502_v37 = vld [vmem:[#allocation40_spill] sm:$0xff] }
  0x47   :  { %445 = vadd.xlane.f32.xlu0 %v444_v34  ;;  %v469_v46 = vadd.f32 %v468_v35, %v345_v43  ;;  %v349_v58 = vmul.f32 %v3491_v23, %v3491_v23  ;;  %v358_v19 = vmul.f32 %v1924_v22, %v1924_v22  ;;  %v360_v36 = vmul.f32 %v3492_v10, %v3492_v10 }
  0x48   :  { %v459_v50 = vadd.f32 %v458_v8, %v337_v33  ;;  %v484_v48 = vadd.f32 %v483_v56, %v356_v1  ;;  %v359_v42 = vmul.f32 %v1946_v0, %v1946_v0  ;;  %v350_v55 = vmul.f32 %v3493_v26, %v3493_v26  ;;  %v3503_v1 = vld [vmem:[#allocation31_spill] sm:$0xff]  ;;  %v3504_v8 = vld [vmem:[#allocation36_spill] sm:$0xff] }
  0x49   :  { %v471_v54 = vadd.f32 %v470_v49, %v469_v46  ;;  %v474_v63 = vadd.f32 %v348_v40, %v347_v12  ;;  %v368_v47 = vmul.f32 %v3494_v39, %v3494_v39  ;;  %v369_v22 = vmul.f32 %v3495_v61, %v3495_v61  ;;  %v3505_v12 = vld [vmem:[#allocation34_spill] sm:$0xff] }
  0x4a   :  { %v460_v62 = vadd.f32 %v459_v50, %v338_v27  ;;  %v485_v21 = vadd.f32 %v484_v48, %v357_v52  ;;  %v351_v5 = vmul.f32 %v3496_v20, %v3496_v20  ;;  %v353_v29 = vmul.f32 %v3497_v18, %v3497_v18 }
  0x4b   :  { %472 = vadd.xlane.f32.xlu1 %v471_v54  ;;  %v475_v0 = vadd.f32 %v474_v63, %v349_v58  ;;  %v370_v57 = vmul.f32 %v1910_v6, %v1910_v6  ;;  %v488_v2 = vsel %vm124_vm0, %v360_v36, 0.0  ;;  %v352_v51 = vmul.f32 %v3498_v32, %v3498_v32 }
  0x4c   :  { %v462_v43 = vadd.f32 %v461_v13, %v460_v62  ;;  %v486_v41 = vadd.f32 %v485_v21, %v358_v19  ;;  %v371_v28 = vmul.f32 %v1939_v16, %v1939_v16  ;;  %v501_v38 = vadd.f32 %v369_v22, %v368_v47 }
  0x4d   :  { %v476_v7 = vadd.f32 %v475_v0, %v350_v55  ;;  %v361_v11 = vmul.f32 %v3499_v25, %v3499_v25  ;;  %v362_v6 = vmul.f32 %v3500_v15, %v3500_v15  ;;  %v363_v30 = vmul.f32 %v3501_v3, %v3501_v3 }
  0x4e   :  { %463 = vadd.xlane.f32.xlu0 %v462_v43  ;;  %v487_v4 = vadd.f32 %v486_v41, %v359_v42  ;;  %v479_v31 = vsel %vm124_vm0, %v353_v29, 0.0  ;;  %v372_v17 = vmul.f32 %v1960_v60, %v1960_v60  ;;  %v502_v33 = vadd.f32 %v501_v38, %v370_v57 }
  0x4f   :  { %v477_v53 = vadd.f32 %v476_v7, %v351_v5  ;;  %v374_v59 = vmul.f32 %v3502_v37, %v3502_v37  ;;  %v364_v34 = vmul.f32 %v3503_v1, %v3503_v1  ;;  %v492_v35 = vadd.f32 %v362_v6, %v361_v11 }
  0x50   :  { %v489_v16 = vadd.f32 %v488_v2, %v487_v4  ;;  %v373_v45 = vmul.f32 %v1971_v44, %v1971_v44  ;;  %v503_v27 = vadd.f32 %v502_v33, %v371_v28  ;;  %v365_v52 = vmul.f32 %v3504_v8, %v3504_v8 }
  0x51   :  { %v478_v49 = vadd.f32 %v477_v53, %v352_v51  ;;  %v493_v56 = vadd.f32 %v492_v35, %v363_v30  ;;  %v367_v46 = vmul.f32 %v3505_v12, %v3505_v12  ;;  %v506_v13 = vsel %vm124_vm0, %v374_v59, 0.0 }
  0x52   :  { %490 = vadd.xlane.f32.xlu1 %v489_v16  ;;  %v504_v14 = vadd.f32 %v503_v27, %v372_v17  ;;  %v366_v24 = vmul.f32 %v1917_v9, %v1917_v9  ;;  %v1312_v36 = vmov 0  }
  0x53   :  { %v480_v60 = vadd.f32 %v479_v31, %v478_v49  ;;  %v494_v40 = vadd.f32 %v493_v56, %v364_v34  ;;  %v497_v50 = vsel %vm124_vm0, %v367_v46, 0.0  ;;  %1175 = vset.pattern.permute.xlu0 %v1312_v36  ;;  %1176 = vset.pattern.permute.xlu1 %v1312_v36 }
  0x54   :  { %v505_v23 = vadd.f32 %v504_v14, %v373_v45 }
  0x55   :  { %481 = vadd.xlane.f32.xlu0 %v480_v60  ;;  %v495_v44 = vadd.f32 %v494_v40, %v365_v52 }
  0x56   :  { %v507_v58 = vadd.f32 %v506_v13, %v505_v23 }
  0x57   :  { %v496_v19 = vadd.f32 %v495_v44, %v366_v24 }
  0x58   :  { %508 = vadd.xlane.f32.xlu1 %v507_v58 }
  0x59   :  { %v498_v10 = vadd.f32 %v497_v50, %v496_v19  ;;  %v600_v50 = vld [vmem:[%s3386_s1] sm:$0xff] }
  0x5b   :  { %499 = vadd.xlane.f32.xlu0 %v498_v10 }
  0x97   :  { %v146_v48 = vpop.xlane.xlu1 %145 }
  0x98   :  { %v2157_v29 = vmul.f32 0.0012755102, %v146_v48 }
  0x99   :  { %v128_v54 = vpop.xlane.xlu0 %127 }
  0x9a   :  { %v2153_v20 = vmul.f32 0.0012755102, %v128_v54  ;;  %v557_v51 = vmul.f32 %v2157_v29, %v2157_v29 }
  0x9c   :  { %v155_v42 = vpop.xlane.xlu1 %154  ;;  %v555_v0 = vmul.f32 %v2153_v20, %v2153_v20 }
  0x9d   :  { %v2167_v38 = vmul.f32 0.0012755102, %v155_v42 }
  0x9e   :  { %v137_v26 = vpop.xlane.xlu0 %136 }
  0x9f   :  { %v2161_v43 = vmul.f32 0.0012755102, %v137_v26  ;;  %v558_v16 = vmul.f32 %v2167_v38, %v2167_v38 }
  0xa0   :  { %v173_v55 = vpop.xlane.xlu1 %172 }
  0xa1   :  { %v556_v25 = vmul.f32 %v2161_v43, %v2161_v43  ;;  %v2177_v34 = vmul.f32 0.0012755102, %v173_v55 }
  0xa3   :  { %v164_v9 = vpop.xlane.xlu0 %163  ;;  %v560_v14 = vmul.f32 %v2177_v34, %v2177_v34 }
  0xa4   :  { %v2171_v4 = vmul.f32 0.0012755102, %v164_v9 }
  0xa5   :  { %v191_v63 = vpop.xlane.xlu1 %190 }
  0xa6   :  { %v559_v37 = vmul.f32 %v2171_v4, %v2171_v4  ;;  %v2183_v23 = vmul.f32 0.0012755102, %v191_v63 }
  0xa8   :  { %v182_v62 = vpop.xlane.xlu0 %181  ;;  %v562_v26 = vmul.f32 %v2183_v23, %v2183_v23 }
  0xa9   :  { %v2179_v52 = vmul.f32 0.0012755102, %v182_v62 }
  0xab   :  { %v2145_v21 = vpop.xlane.xlu1 %208  ;;  %v561_v44 = vmul.f32 %v2179_v52, %v2179_v52 }
  0xae   :  { %v200_v39 = vpop.xlane.xlu0 %199 }
  0xaf   :  { %v2190_v54 = vmul.f32 0.0012755102, %v200_v39 }
  0xb1   :  { %v2147_v47 = vpop.xlane.xlu1 %226  ;;  %v563_v39 = vmul.f32 %v2190_v54, %v2190_v54 }
  0xb3   :  { %v2149_v61 = vpop.xlane.xlu0 %217 }
  0xb6   :  { %v2151_v22 = vpop.xlane.xlu1 %244 }
  0xb8   :  { %v2155_v5 = vpop.xlane.xlu0 %235 }
  0xba   :  { %v383_v18 = vpop.xlane.xlu1 %382 }
  0xbb   :  { %v540_v57 = vmul.f32 0.0012755102, %v383_v18 }
  0xbc   :  { %v2163_v41 = vpop.xlane.xlu0 %253 }
  0xbd   :  { %v570_v2 = vsub.f32 %v540_v57, %v555_v0  ;;  %v2198_v57 = vmul.f32 0.0012755102, %v2145_v21 }
  0xbe   :  { %v401_v32 = vpop.xlane.xlu1 %400 }
  0xbf   :  { %v585_v7 = vmax.f32 %v570_v2, 0.0  ;;  %v542_v28 = vmul.f32 0.0012755102, %v401_v32  ;;  %v2203_v2 = vmul.f32 0.0012755102, %v2149_v61 }
  0xc0   :  { %v392_v11 = vpop.xlane.xlu0 %391 }
  0xc1   :  { %v630_v15 = vadd.f32 0.001, %v585_v7  ;;  %v572_v6 = vsub.f32 %v542_v28, %v557_v51  ;;  %v541_v3 = vmul.f32 0.0012755102, %v392_v11  ;;  %v601_v51 = vld [vmem:[%s3386_s1 + $0x8] sm:$0xff]  ;;  %v565_v61 = vmul.f32 %v2203_v2, %v2203_v2 }
  0xc2   :  { %v419_v30 = vpop.xlane.xlu1 %418 }
  0xc3   :  { %1177 = vrsqrt.f32 %v630_v15  ;;  %v587_v53 = vmax.f32 %v572_v6, 0.0  ;;  %v571_v31 = vsub.f32 %v541_v3, %v556_v25  ;;  %v544_v17 = vmul.f32 0.0012755102, %v419_v30 }
  0xc4   :  { %v410_v33 = vpop.xlane.xlu0 %409  ;;  %v564_v30 = vmul.f32 %v2198_v57, %v2198_v57 }
  0xc5   :  { %v586_v59 = vmax.f32 %v571_v31, 0.0  ;;  %v543_v1 = vmul.f32 0.0012755102, %v410_v33  ;;  %v632_v35 = vadd.f32 0.001, %v587_v53  ;;  %v574_v45 = vsub.f32 %v544_v17, %v559_v37  ;;  %v602_v31 = vld [vmem:[%s3386_s1 + $0x10] sm:$0xff] }
  0xc6   :  { %v437_v8 = vpop.xlane.xlu1 %436  ;;  %v2218_v17 = vmul.f32 0.0012755102, %v2155_v5  ;;  %v2222_v33 = vmul.f32 0.0012755102, %v2147_v47  ;;  %v603_v5 = vld [vmem:[%s3386_s1 + $0x18] sm:$0xff] }
  0xc7   :  { %v631_v49 = vadd.f32 0.001, %v586_v59  ;;  %v573_v27 = vsub.f32 %v543_v1, %v558_v16  ;;  %v589_v46 = vmax.f32 %v574_v45, 0.0  ;;  %v546_v24 = vmul.f32 0.0012755102, %v437_v8 }
  0xc8   :  { %v2232_v47 = vmul.f32 0.0012755102, %v2163_v41  ;;  %v604_v41 = vld [vmem:[%s3386_s1 + $0x20] sm:$0xff] }
  0xc9   :  { %1179 = vrsqrt.f32 %v631_v49  ;;  %v588_v56 = vmax.f32 %v573_v27, 0.0  ;;  %v428_v60 = vpop.xlane.xlu0 %427  ;;  %v634_v19 = vadd.f32 0.001, %v589_v46  ;;  %v576_v10 = vsub.f32 %v546_v24, %v561_v44 }
  0xca   :  { %v545_v12 = vmul.f32 0.0012755102, %v428_v60  ;;  %1181 = vrsqrt.f32 %v632_v35  ;;  %v566_v60 = vmul.f32 %v2222_v33, %v2222_v33 }
  0xcb   :  { %v633_v13 = vadd.f32 0.001, %v588_v56  ;;  %v591_v62 = vmax.f32 %v576_v10, 0.0  ;;  %v567_v56 = vmul.f32 %v2218_v17, %v2218_v17  ;;  %v569_v10 = vmul.f32 %v2232_v47, %v2232_v47 }
  0xcc   :  { %v575_v40 = vsub.f32 %v545_v12, %v560_v14 }
  0xcd   :  { %v455_v58 = vpop.xlane.xlu1 %454  ;;  %1183 = vrsqrt.f32 %v633_v13  ;;  %v636_v11 = vadd.f32 0.001, %v591_v62 }
  0xce   :  { %v590_v36 = vmax.f32 %v575_v40, 0.0  ;;  %v548_v63 = vmul.f32 0.0012755102, %v455_v58  ;;  %1185 = vrsqrt.f32 %v634_v19  ;;  %v2244_v19 = vmul.f32 0.0012755102, %v2151_v22 }
  0xd0   :  { %v1178_v48 = vpop.eup %1177  ;;  %v446_v42 = vpop.xlane.xlu0 %445  ;;  %v635_v18 = vadd.f32 0.001, %v590_v36  ;;  %v578_v28 = vsub.f32 %v548_v63, %v563_v39 }
  0xd1   :  { %v547_v55 = vmul.f32 0.0012755102, %v446_v42  ;;  %v2194_v9 = vmul.f32 %v1178_v48, %v600_v50 }
  0xd2   :  { %1187 = vrsqrt.f32 %v635_v18  ;;  %v593_v16 = vmax.f32 %v578_v28, 0.0  ;;  %v605_v18 = vld [vmem:[%s3386_s1 + $0x28] sm:$0xff] }
  0xd3   :  { %v577_v0 = vsub.f32 %v547_v55, %v562_v26  ;;  %707 = vperm.xlu0 %1175, %v2194_v9   ;;  %1189 = vrsqrt.f32 %v636_v11 }
  0xd4   :  { %v473_v32 = vpop.xlane.xlu1 %472  ;;  %v638_v14 = vadd.f32 0.001, %v593_v16 }
  0xd5   :  { %v550_v25 = vmul.f32 0.0012755102, %v473_v32  ;;  %v592_v15 = vmax.f32 %v577_v0, 0.0  ;;  %v568_v32 = vmul.f32 %v2244_v19, %v2244_v19 }
  0xd6   :  { %v1180_v7 = vpop.eup %1179 }
  0xd7   :  { %v464_v6 = vpop.xlane.xlu0 %463  ;;  %v2208_v21 = vmul.f32 %v1180_v7, %v601_v51  ;;  %v1182_v3 = vpop.eup %1181  ;;  %v580_v37 = vsub.f32 %v550_v25, %v565_v61  ;;  %v637_v1 = vadd.f32 0.001, %v592_v15  ;;  %v609_v61 = vld [vmem:[%s3386_s1 + $0x48] sm:$0xff] }
  0xd8   :  { %v549_v53 = vmul.f32 0.0012755102, %v464_v6  ;;  %v2224_v49 = vmul.f32 %v1182_v3, %v602_v31  ;;  %v606_v6 = vld [vmem:[%s3386_s1 + $0x30] sm:$0xff] }
  0xd9   :  { %712 = vperm.xlu1 %1176, %v2208_v21   ;;  %v595_v12 = vmax.f32 %v580_v37, 0.0  ;;  %1191 = vrsqrt.f32 %v637_v1  ;;  %v607_v37 = vld [vmem:[%s3386_s1 + $0x38] sm:$0xff] }
  0xda   :  { %v579_v59 = vsub.f32 %v549_v53, %v564_v30  ;;  %v1184_v45 = vpop.eup %1183 }
  0xdb   :  { %v491_v35 = vpop.xlane.xlu1 %490  ;;  %v2237_v44 = vmul.f32 %v1184_v45, %v603_v5  ;;  %v1186_v58 = vpop.eup %1185  ;;  %v640_v36 = vadd.f32 0.001, %v595_v12 }
  0xdc   :  { %v594_v27 = vmax.f32 %v579_v59, 0.0  ;;  %v552_v8 = vmul.f32 0.0012755102, %v491_v35  ;;  %v2248_v63 = vmul.f32 %v1186_v58, %v604_v41 }
  0xdd   :  { %717 = vperm.xlu1 %1176, %v2224_v49  }
  0xde   :  { %v639_v46 = vadd.f32 0.001, %v594_v27  ;;  %v482_v13 = vpop.xlane.xlu0 %481  ;;  %v582_v24 = vsub.f32 %v552_v8, %v567_v56  ;;  %v608_v27 = vld [vmem:[%s3386_s1 + $0x40] sm:$0xff]  ;;  %v611_v8 = vld [vmem:[%s3386_s1 + $0x58] sm:$0xff] }
  0xdf   :  { %v551_v40 = vmul.f32 0.0012755102, %v482_v13  ;;  %v1188_v62 = vpop.eup %1187 }
  0xe0   :  { %1193 = vrsqrt.f32 %v639_v46  ;;  %v597_v42 = vmax.f32 %v582_v24, 0.0  ;;  %v2256_v25 = vmul.f32 %v1188_v62, %v605_v18  ;;  %v1190_v11 = vpop.eup %1189  ;;  %v612_v24 = vld [vmem:[%s3386_s1 + $0x60] sm:$0xff]  ;;  %v677_v18 = vmul.f32 %v2224_v49, %v2157_v29  ;;  %v618_v29 = vld [vmem:[%s3387_s2 + $0x18] sm:$0xff] }
  0xe1   :  { %v581_v50 = vsub.f32 %v551_v40, %v566_v60  ;;  %722 = vperm.xlu1 %1176, %v2237_v44   ;;  %1195 = vrsqrt.f32 %v638_v14  ;;  %v509_v48 = vpop.xlane.xlu1 %508  ;;  %v666_v53 = vmul.f32 %v1190_v11, %v606_v6  ;;  %v610_v14 = vld [vmem:[%s3386_s1 + $0x50] sm:$0xff]  ;;  %v613_v40 = vld [vmem:[%s3386_s1 + $0x68] sm:$0xff] }
  0xe2   :  { %v554_v55 = vmul.f32 0.0012755102, %v509_v48  ;;  %1197 = vrsqrt.f32 %v640_v36  ;;  %v642_v7 = vadd.f32 0.001, %v597_v42  ;;  %v675_v36 = vmul.f32 %v2194_v9, %v2153_v20  ;;  %v614_v48 = vld [vmem:[%s3386_s1 + $0x70] sm:$0xff]  ;;  %v615_v42 = vld [vmem:[%s3387_s2] sm:$0xff] }
  0xe3   :  { %v596_v26 = vmax.f32 %v581_v50, 0.0  ;;  %v616_v20 = vld [vmem:[%s3387_s2 + $0x8] sm:$0xff]  ;;  %v617_v9 = vld [vmem:[%s3387_s2 + $0x10] sm:$0xff] }
  0xe4   :  { %v584_v39 = vsub.f32 %v554_v55, %v569_v10  ;;  %v500_v22 = vpop.xlane.xlu0 %499  ;;  %v676_v55 = vmul.f32 %v2208_v21, %v2161_v43  ;;  %v690_v62 = vsub.f32 %v615_v42, %v675_v36  ;;  %v679_v43 = vmul.f32 %v2248_v63, %v2171_v4  ;;  %v619_v21 = vld [vmem:[%s3387_s2 + $0x20] sm:$0xff]  ;;  %v620_v4 = vld [vmem:[%s3387_s2 + $0x28] sm:$0xff]  ;;  %v1213_v42 = vld [vmem:[%s3385_s0 + $0x30] sm:$0xff] }
  0xe5   :  { %v641_v0 = vadd.f32 0.001, %v596_v26  ;;  %727 = vperm.xlu1 %1176, %v2248_v63   ;;  %v553_v51 = vmul.f32 0.0012755102, %v500_v22  ;;  %v692_v22 = vsub.f32 %v617_v9, %v677_v18  ;;  %v1212_v36 = vld [vmem:[%s3385_s0 + $0x28] sm:$0xff]  ;;  %v1215_v18 = vld [vmem:[%s3385_s0 + $0x40] sm:$0xff] }
  0xe6   :  { %v599_v28 = vmax.f32 %v584_v39, 0.0  ;;  %v1192_v31 = vpop.eup %1191  ;;  %v678_v39 = vmul.f32 %v2237_v44, %v2167_v38  ;;  %v681_v38 = vmul.f32 %v666_v53, %v2179_v52  ;;  %v621_v44 = vld [vmem:[%s3387_s2 + $0x30] sm:$0xff]  ;;  %v623_v52 = vld [vmem:[%s3387_s2 + $0x40] sm:$0xff]  ;;  %v1216_v9 = vld [vmem:[%s3385_s0 + $0x48] sm:$0xff] }
  0xe7   :  { %1199 = vrsqrt.f32 %v641_v0  ;;  %v583_v15 = vsub.f32 %v553_v51, %v568_v32  ;;  %v667_v45 = vmul.f32 %v1192_v31, %v607_v37  ;;  %v691_v0 = vsub.f32 %v616_v20, %v676_v55  ;;  %v1214_v55 = vld [vmem:[%s3385_s0 + $0x38] sm:$0xff] }
  0xe8   :  { %1201 = vrsqrt.f32 %v642_v7  ;;  %v644_v30 = vadd.f32 0.001, %v599_v28  ;;  %v693_v49 = vsub.f32 %v618_v29, %v678_v39  ;;  %v680_v32 = vmul.f32 %v2256_v25, %v2177_v34  ;;  %v622_v34 = vld [vmem:[%s3387_s2 + $0x38] sm:$0xff]  ;;  %v1217_v39 = vld [vmem:[%s3385_s0 + $0x50] sm:$0xff] }
  0xe9   :  { %732 = vperm.xlu1 %1176, %v2256_v25   ;;  %v598_v3 = vmax.f32 %v583_v15, 0.0  ;;  %v694_v51 = vsub.f32 %v619_v21, %v679_v43  ;;  %v682_v7 = vmul.f32 %v667_v45, %v2183_v23  ;;  %v696_v28 = vsub.f32 %v621_v44, %v681_v38  ;;  %v1218_v43 = vld [vmem:[%s3385_s0 + $0x58] sm:$0xff]  ;;  %v1219_v21 = vld [vmem:[%s3385_s0 + $0x60] sm:$0xff]  ;;  %v1221_v38 = vld [vmem:[%s3385_s0 + $0x70] sm:$0xff] }
  0xea   :  { %v695_v63 = vsub.f32 %v620_v4, %v680_v32  ;;  %v1220_v32 = vld [vmem:[%s3385_s0 + $0x68] sm:$0xff]  ;;  %v1222_v44 = vld [vmem:[%s3385_s0 + $0x78] sm:$0xff] }
  0xeb   :  { %v643_v16 = vadd.f32 0.001, %v598_v3  ;;  %v697_v25 = vsub.f32 %v622_v34, %v682_v7  ;;  %v625_v3 = vld [vmem:[%s3387_s2 + $0x50] sm:$0xff]  ;;  %v1223_v7 = vld [vmem:[%s3385_s0 + $0x80] sm:$0xff] }
  0xed   :  { %v1194_v59 = vpop.eup %1193  ;;  %737 = vperm.xlu1 %1176, %v666_v53   ;;  %1203 = vrsqrt.f32 %v643_v16 }
  0xee   :  { %v2268_v1 = vmul.f32 %v1194_v59, %v609_v61  ;;  %v1196_v35 = vpop.eup %1195  ;;  %1205 = vrsqrt.f32 %v644_v30 }
  0xef   :  { %v1198_v5 = vpop.eup %1197  ;;  %v668_v56 = vmul.f32 %v1196_v35, %v608_v27 }
  0xf0   :  { %752 = vperm.xlu0 %1175, %v2268_v1   ;;  %v670_v46 = vmul.f32 %v1198_v5, %v610_v14  ;;  %v684_v15 = vmul.f32 %v2268_v1, %v2198_v57  ;;  %v626_v57 = vld [vmem:[%s3387_s2 + $0x58] sm:$0xff] }
  0xf1   :  { %742 = vperm.xlu1 %1176, %v667_v45   ;;  %v683_v11 = vmul.f32 %v668_v56, %v2190_v54  ;;  %v624_v54 = vld [vmem:[%s3387_s2 + $0x48] sm:$0xff] }
  0xf2   :  { %v685_v23 = vmul.f32 %v670_v46, %v2203_v2  ;;  %v699_v30 = vsub.f32 %v624_v54, %v684_v15  ;;  %v627_v2 = vld [vmem:[%s3387_s2 + $0x60] sm:$0xff]  ;;  %v1226_v15 = vld [vmem:[%s3385_s0 + $0x98] sm:$0xff] }
  0xf3   :  { %v698_v6 = vsub.f32 %v623_v52, %v683_v11  ;;  %v1224_v11 = vld [vmem:[%s3385_s0 + $0x88] sm:$0xff]  ;;  %v1225_v52 = vld [vmem:[%s3385_s0 + $0x90] sm:$0xff]  ;;  %v1227_v54 = vld [vmem:[%s3385_s0 + $0xa0] sm:$0xff] }
  0xf4   :  { %v1200_v60 = vpop.eup %1199  ;;  %v700_v53 = vsub.f32 %v625_v3, %v685_v23 }
  0xf5   :  { %v671_v12 = vmul.f32 %v1200_v60, %v611_v8  ;;  %747 = vperm.xlu1 %1176, %v668_v56   ;;  %v1202_v13 = vpop.eup %1201  ;;  %v1207_v60 = vld [vmem:[%s3385_s0] sm:$0xff] }
  0xf6   :  { %v672_v41 = vmul.f32 %v1202_v13, %v612_v24  ;;  %v1209_v13 = vld [vmem:[%s3385_s0 + $0x10] sm:$0xff] }
  0xf7   :  { %762 = vperm.xlu0 %1175, %v671_v12   ;;  %v686_v61 = vmul.f32 %v671_v12, %v2222_v33  ;;  %v629_v33 = vld [vmem:[%s3387_s2 + $0x70] sm:$0xff]  ;;  %v1208_v12 = vld [vmem:[%s3385_s0 + $0x8] sm:$0xff] }
  0xf8   :  { %v687_v31 = vmul.f32 %v672_v41, %v2218_v17  ;;  %v628_v17 = vld [vmem:[%s3387_s2 + $0x68] sm:$0xff] }
  0xf9   :  { %757 = vperm.xlu1 %1176, %v670_v46   ;;  %v701_v16 = vsub.f32 %v626_v57, %v686_v61  ;;  %v1230_v57 = vld [vmem:[%s3385_s0 + $0xb8] sm:$0xff] }
  0xfa   :  { %v1204_v58 = vpop.eup %1203  ;;  %v702_v59 = vsub.f32 %v627_v2, %v687_v31 }
  0xfb   :  { %v1206_v50 = vpop.eup %1205  ;;  %v673_v10 = vmul.f32 %v1204_v58, %v613_v40  ;;  %v1210_v40 = vld [vmem:[%s3385_s0 + $0x18] sm:$0xff] }
  0xfc   :  { %v674_v26 = vmul.f32 %v1206_v50, %v614_v48  ;;  %v1211_v50 = vld [vmem:[%s3385_s0 + $0x20] sm:$0xff] }
  0xfd   :  { %767 = vperm.xlu1 %1176, %v672_v41   ;;  %772 = vperm.xlu0 %1175, %v673_v10   ;;  %v688_v37 = vmul.f32 %v673_v10, %v2244_v19 }
  0xfe   :  { %v689_v1 = vmul.f32 %v674_v26, %v2232_v47 }
  0xff   :  { %v703_v35 = vsub.f32 %v628_v17, %v688_v37  ;;  %v1231_v37 = vld [vmem:[%s3385_s0 + $0xc0] sm:$0xff] }
 0x100   :  { %v704_v45 = vsub.f32 %v629_v33, %v689_v1  ;;  %v1232_v1 = vld [vmem:[%s3385_s0 + $0xc8] sm:$0xff]  ;;  %v1233_v33 = vld [vmem:[%s3385_s0 + $0xd0] sm:$0xff] }
 0x101   :  { %777 = vperm.xlu1 %1176, %v674_v26   ;;  %887 = vperm.xlu0 %1175, %v690_v62  }
 0x105   :  { %892 = vperm.xlu1 %1176, %v691_v0   ;;  %897 = vperm.xlu0 %1175, %v692_v22  }
 0x109   :  { %902 = vperm.xlu1 %1176, %v693_v49   ;;  %907 = vperm.xlu0 %1175, %v694_v51  }
 0x10d   :  { %912 = vperm.xlu1 %1176, %v695_v63   ;;  %917 = vperm.xlu0 %1175, %v696_v28  }
 0x111   :  { %922 = vperm.xlu1 %1176, %v697_v25   ;;  %927 = vperm.xlu0 %1175, %v698_v6  }
 0x115   :  { %932 = vperm.xlu1 %1176, %v699_v30   ;;  %937 = vperm.xlu0 %1175, %v700_v53   ;;  %v1228_v30 = vld [vmem:[%s3385_s0 + $0xa8] sm:$0xff]  ;;  %v1229_v53 = vld [vmem:[%s3385_s0 + $0xb0] sm:$0xff] }
 0x119   :  { %942 = vperm.xlu1 %1176, %v701_v16   ;;  %947 = vperm.xlu0 %1175, %v702_v59  }
 0x11d   :  { %952 = vperm.xlu1 %1176, %v703_v35   ;;  %957 = vperm.xlu0 %1175, %v704_v45   ;;  %v1234_v45 = vld [vmem:[%s3385_s0 + $0xd8] sm:$0xff] }
 0x14e   :  { %v708_v56 = vpop.permute.xlu0 %707 }
 0x14f   :  { %v2363_v14 = vmul.f32 %v1207_v60, %v708_v56  ;;  %v2368_v46 = vmul.f32 %v1208_v12, %v708_v56  ;;  %v2373_v24 = vmul.f32 %v1209_v13, %v708_v56  ;;  %v2378_v58 = vmul.f32 %v1210_v40, %v708_v56  ;;  %v1236_v60 = vld [vmem:[%s3385_s0 + $0xe8] sm:$0xff]  ;;  %v1237_v13 = vld [vmem:[%s3385_s0 + $0xf0] sm:$0xff]  ;;  %v1238_v40 = vld [vmem:[%s3385_s0 + $0xf8] sm:$0xff] }
 0x150   :  { %v2385_v10 = vmul.f32 %v1211_v50, %v708_v56  ;;  %v2390_v48 = vmul.f32 %v1212_v36, %v708_v56  ;;  %v2395_v26 = vmul.f32 %v1213_v42, %v708_v56  ;;  %v1239_v36 = vld [vmem:[%s3385_s0 + $0x100] sm:$0xff] }
 0x154   :  { %v713_v27 = vpop.permute.xlu1 %712 }
 0x155   :  { %v2400_v62 = vmul.f32 %v1214_v55, %v713_v27  ;;  %v2405_v20 = vmul.f32 %v1215_v18, %v713_v27  ;;  %v2410_v0 = vmul.f32 %v1216_v9, %v713_v27  ;;  %v2415_v22 = vmul.f32 %v1217_v39, %v713_v27  ;;  %v1240_v55 = vld [vmem:[%s3385_s0 + $0x108] sm:$0xff]  ;;  %v1241_v9 = vld [vmem:[%s3385_s0 + $0x110] sm:$0xff] }
 0x156   :  { %v2420_v29 = vmul.f32 %v1218_v43, %v713_v27  ;;  %v2425_v49 = vmul.f32 %v1219_v21, %v713_v27  ;;  %v2430_v51 = vmul.f32 %v1220_v32, %v713_v27  ;;  %v1242_v43 = vld [vmem:[%s3385_s0 + $0x118] sm:$0xff] }
 0x158   :  { %v718_v8 = vpop.permute.xlu1 %717 }
 0x159   :  { %v2435_v4 = vmul.f32 %v1221_v38, %v718_v8  ;;  %v2440_v63 = vmul.f32 %v1222_v44, %v718_v8  ;;  %v2445_v28 = vmul.f32 %v1223_v7, %v718_v8  ;;  %v2450_v34 = vmul.f32 %v1224_v11, %v718_v8  ;;  %v1243_v38 = vld [vmem:[%s3385_s0 + $0x120] sm:$0xff]  ;;  %v1245_v11 = vld [vmem:[%s3385_s0 + $0x130] sm:$0xff] }
 0x15a   :  { %v2455_v25 = vmul.f32 %v1225_v52, %v718_v8  ;;  %v2460_v6 = vmul.f32 %v1226_v15, %v718_v8  ;;  %v2467_v3 = vmul.f32 %v1227_v54, %v718_v8  ;;  %v1235_v8 = vld [vmem:[%s3385_s0 + $0xe0] sm:$0xff]  ;;  %v1246_v15 = vld [vmem:[%s3385_s0 + $0x138] sm:$0xff] }
 0x15c   :  { %v723_v19 = vpop.permute.xlu1 %722 }
 0x15d   :  { %v2472_v61 = vmul.f32 %v1228_v30, %v723_v19  ;;  %v2477_v31 = vmul.f32 %v1229_v53, %v723_v19  ;;  %v2482_v2 = vmul.f32 %v1230_v57, %v723_v19  ;;  %v2489_v59 = vmul.f32 %v1231_v37, %v723_v19  ;;  %v1247_v30 = vld [vmem:[%s3385_s0 + $0x140] sm:$0xff]  ;;  %v1248_v57 = vld [vmem:[%s3385_s0 + $0x148] sm:$0xff] }
 0x15e   :  { %v2494_v17 = vmul.f32 %v1232_v1, %v723_v19  ;;  %v2499_v35 = vmul.f32 %v1233_v33, %v723_v19  ;;  %v2504_v27 = vmul.f32 %v1234_v45, %v723_v19  ;;  %v1249_v1 = vld [vmem:[%s3385_s0 + $0x150] sm:$0xff]  ;;  %v1250_v45 = vld [vmem:[%s3385_s0 + $0x158] sm:$0xff] }
 0x160   :  { %v2356_v5 = vpop.permute.xlu1 %727 }
 0x161   :  { %v2510_v56 = vmul.f32 %v1235_v8, %v2356_v5  ;;  %v2516_v12 = vmul.f32 %v1236_v60, %v2356_v5  ;;  %v2522_v19 = vmul.f32 %v1237_v13, %v2356_v5  ;;  %v2528_v50 = vmul.f32 %v1238_v40, %v2356_v5  ;;  %v1251_v60 = vld [vmem:[%s3385_s0 + $0x160] sm:$0xff]  ;;  %v1252_v13 = vld [vmem:[%s3385_s0 + $0x168] sm:$0xff] }
 0x162   :  { %v2534_v42 = vmul.f32 %v1239_v36, %v2356_v5  ;;  %v2540_v18 = vmul.f32 %v1240_v55, %v2356_v5  ;;  %v2546_v39 = vmul.f32 %v1241_v9, %v2356_v5  ;;  %v1244_v5 = vld [vmem:[%s3385_s0 + $0x128] sm:$0xff]  ;;  %v1253_v36 = vld [vmem:[%s3385_s0 + $0x170] sm:$0xff]  ;;  %v1254_v9 = vld [vmem:[%s3385_s0 + $0x178] sm:$0xff] }
 0x164   :  { %v2358_v47 = vpop.permute.xlu1 %732 }
 0x165   :  { %v2552_v21 = vmul.f32 %v1242_v43, %v2358_v47  ;;  %v2560_v44 = vmul.f32 %v1243_v38, %v2358_v47  ;;  %v2566_v7 = vmul.f32 %v1244_v5, %v2358_v47  ;;  %v2572_v52 = vmul.f32 %v1245_v11, %v2358_v47  ;;  %v1255_v5 = vld [vmem:[%s3385_s0 + $0x1f8] sm:$0xff] }
 0x166   :  { %v2578_v54 = vmul.f32 %v1246_v15, %v2358_v47  ;;  %v2584_v53 = vmul.f32 %v1247_v30, %v2358_v47  ;;  %v2590_v37 = vmul.f32 %v1248_v57, %v2358_v47  ;;  %v1256_v15 = vld [vmem:[%s3385_s0 + $0x200] sm:$0xff]  ;;  %v1257_v57 = vld [vmem:[%s3385_s0 + $0x208] sm:$0xff] }
 0x168   :  { %v2380_v41 = vpop.permute.xlu1 %737 }
 0x169   :  { %v2596_v33 = vmul.f32 %v1249_v1, %v2380_v41  ;;  %v2602_v8 = vmul.f32 %v1250_v45, %v2380_v41  ;;  %v2608_v47 = vmul.f32 %v1251_v60, %v2380_v41  ;;  %v2614_v40 = vmul.f32 %v1252_v13, %v2380_v41  ;;  %v1258_v45 = vld [vmem:[%s3385_s0 + $0x180] sm:$0xff] }
 0x16a   :  { %v2620_v55 = vmul.f32 %v1253_v36, %v2380_v41  ;;  %v2626_v43 = vmul.f32 %v1254_v9, %v2380_v41  ;;  %v2650_v60 = vmul.f32 %v1258_v45, %v2380_v41  ;;  %v1259_v36 = vld [vmem:[%s3385_s0 + $0x210] sm:$0xff]  ;;  %v1261_v41 = vld [vmem:[%s3385_s0 + $0x220] sm:$0xff]  ;;  %v1262_v45 = vld [vmem:[%s3385_s0 + $0x228] sm:$0xff] }
 0x16b   :  { %v2484_v16 = vpop.permute.xlu0 %752 }
 0x16c   :  { %v2462_v23 = vpop.permute.xlu1 %742  ;;  %v2632_v11 = vmul.f32 %v1255_v5, %v2484_v16  ;;  %v2638_v30 = vmul.f32 %v1256_v15, %v2484_v16  ;;  %v2644_v1 = vmul.f32 %v1257_v57, %v2484_v16  ;;  %v2658_v9 = vmul.f32 %v1259_v36, %v2484_v16  ;;  %v1260_v5 = vld [vmem:[%s3385_s0 + $0x218] sm:$0xff] }
 0x16d   :  { %v2664_v15 = vmul.f32 %v1260_v5, %v2484_v16  ;;  %v2670_v57 = vmul.f32 %v1261_v41, %v2484_v16  ;;  %v2676_v36 = vmul.f32 %v1262_v45, %v2484_v16  ;;  %v1266_v45 = vld [vmem:[%s3385_s0 + $0x1a0] sm:$0xff] }
 0x16e   :  { %3506 = vst [vmem:[#allocation15_spill] sm:$0xff] %v2632_v11  ;;  %3507 = vst [vmem:[#allocation2_spill] sm:$0xff] %v2638_v30  ;;  %v1269_v30 = vld [vmem:[%s3385_s0 + $0x1b8] sm:$0xff]  ;;  %v1270_v11 = vld [vmem:[%s3385_s0 + $0x1c0] sm:$0xff] }
 0x16f   :  { %3508 = vst [vmem:[#allocation3_spill] sm:$0xff] %v2644_v1  ;;  %3509 = vst [vmem:[#allocation4_spill] sm:$0xff] %v2658_v9  ;;  %v1263_v9 = vld [vmem:[%s3385_s0 + $0x188] sm:$0xff]  ;;  %v1268_v1 = vld [vmem:[%s3385_s0 + $0x1b0] sm:$0xff] }
 0x170   :  { %v2554_v32 = vpop.permute.xlu1 %747  ;;  %3510 = vst [vmem:[#allocation19_spill] sm:$0xff] %v2664_v15  ;;  %3511 = vst [vmem:[#allocation5_spill] sm:$0xff] %v2670_v57  ;;  %v2682_v5 = vmul.f32 %v1263_v9, %v2462_v23  ;;  %v1264_v15 = vld [vmem:[%s3385_s0 + $0x190] sm:$0xff]  ;;  %v1265_v57 = vld [vmem:[%s3385_s0 + $0x198] sm:$0xff]  ;;  %v2700_v9 = vmul.f32 %v1266_v45, %v2462_v23  ;;  %v2718_v45 = vmul.f32 %v1269_v30, %v2462_v23 }
 0x171   :  { %3512 = vst [vmem:[#allocation6_spill] sm:$0xff] %v2676_v36  ;;  %v2688_v41 = vmul.f32 %v1264_v15, %v2462_v23  ;;  %v2694_v16 = vmul.f32 %v1265_v57, %v2462_v23  ;;  %v1267_v36 = vld [vmem:[%s3385_s0 + $0x1a8] sm:$0xff]  ;;  %v2712_v57 = vmul.f32 %v1268_v1, %v2462_v23  ;;  %v1273_v30 = vld [vmem:[%s3385_s0 + $0x1d8] sm:$0xff] }
 0x172   :  { %v763_v38 = vpop.permute.xlu0 %762  ;;  %3515 = vst [vmem:[#allocation7_spill] sm:$0xff] %v2700_v9  ;;  %v2706_v15 = vmul.f32 %v1267_v36, %v2462_v23  ;;  %3518 = vst [vmem:[#allocation10_spill] sm:$0xff] %v2718_v45  ;;  %v2724_v36 = vmul.f32 %v1270_v11, %v2554_v32  ;;  %v2742_v11 = vmul.f32 %v1273_v30, %v2554_v32  ;;  %v1274_v45 = vld [vmem:[%s3385_s0 + $0x1e0] sm:$0xff] }
 0x173   :  { %3513 = vst [vmem:[#allocation22_spill] sm:$0xff] %v2688_v41  ;;  %3514 = vst [vmem:[#allocation24_spill] sm:$0xff] %v2694_v16  ;;  %v1280_v9 = vld [vmem:[%s3385_s0 + $0x280] sm:$0xff] }
 0x174   :  { %v2652_v13 = vpop.permute.xlu1 %757  ;;  %3516 = vst [vmem:[#allocation8_spill] sm:$0xff] %v2706_v15  ;;  %3517 = vst [vmem:[#allocation9_spill] sm:$0xff] %v2712_v57  ;;  %v1271_v15 = vld [vmem:[%s3385_s0 + $0x1c8] sm:$0xff]  ;;  %v1272_v57 = vld [vmem:[%s3385_s0 + $0x1d0] sm:$0xff]  ;;  %v2782_v16 = vmul.f32 %v1280_v9, %v763_v38 }
 0x175   :  { %3519 = vst [vmem:[#allocation11_spill] sm:$0xff] %v2724_v36  ;;  %v2730_v1 = vmul.f32 %v1271_v15, %v2554_v32  ;;  %v2736_v23 = vmul.f32 %v1272_v57, %v2554_v32  ;;  %3522 = vst [vmem:[#allocation13_spill] sm:$0xff] %v2742_v11  ;;  %v2748_v15 = vmul.f32 %v1274_v45, %v2554_v32  ;;  %v1275_v57 = vld [vmem:[%s3385_s0 + $0x268] sm:$0xff]  ;;  %v1276_v36 = vld [vmem:[%s3385_s0 + $0x270] sm:$0xff] }
 0x176   :  { %v2758_v30 = vmul.f32 %v1276_v36, %v763_v38  ;;  %v1277_v45 = vld [vmem:[%s3385_s0 + $0x1e8] sm:$0xff]  ;;  %v1279_v36 = vld [vmem:[%s3385_s0 + $0x278] sm:$0xff]  ;;  %3529 = vst [vmem:[#allocation17_spill] sm:$0xff] %v2782_v16  ;;  %v1284_v9 = vld [vmem:[%s3385_s0 + $0x230] sm:$0xff] }
 0x177   :  { %3520 = vst [vmem:[#allocation26_spill] sm:$0xff] %v2730_v1  ;;  %3521 = vst [vmem:[#allocation12_spill] sm:$0xff] %v2736_v23  ;;  %v2753_v23 = vmul.f32 %v1275_v57, %v763_v38  ;;  %v1278_v57 = vld [vmem:[%s3385_s0 + $0x1f0] sm:$0xff]  ;;  %v2803_v16 = vmul.f32 %v1284_v9, %v2652_v13 }
 0x178   :  { %3523 = vst [vmem:[#allocation32_spill] sm:$0xff] %v2748_v15  ;;  %v768_v1 = vpop.permute.xlu1 %767  ;;  %3525 = vst [vmem:[#allocation14_spill] sm:$0xff] %v2758_v30  ;;  %v2760_v11 = vpop.permute.xlu0 %772  ;;  %v2766_v15 = vmul.f32 %v1277_v45, %v2554_v32  ;;  %v2777_v30 = vmul.f32 %v1279_v36, %v763_v38  ;;  %v1281_v45 = vld [vmem:[%s3385_s0 + $0x288] sm:$0xff]  ;;  %v1283_v36 = vld [vmem:[%s3385_s0 + $0x298] sm:$0xff] }
 0x179   :  { %3524 = vst [vmem:[#allocation33_spill] sm:$0xff] %v2753_v23  ;;  %v2772_v23 = vmul.f32 %v1278_v57, %v2554_v32  ;;  %v1282_v32 = vld [vmem:[%s3385_s0 + $0x290] sm:$0xff]  ;;  %3533 = vst [vmem:[#allocation37_spill] sm:$0xff] %v2803_v16 }
 0x17a   :  { %3526 = vst [vmem:[#allocation35_spill] sm:$0xff] %v2766_v15  ;;  %3528 = vst [vmem:[#allocation16_spill] sm:$0xff] %v2777_v30  ;;  %v2787_v15 = vmul.f32 %v1281_v45, %v763_v38  ;;  %v2792_v57 = vmul.f32 %v1282_v32, %v763_v38  ;;  %v2797_v30 = vmul.f32 %v1283_v36, %v763_v38  ;;  %v1285_v45 = vld [vmem:[%s3385_s0 + $0x238] sm:$0xff]  ;;  %v1287_v36 = vld [vmem:[%s3385_s0 + $0x248] sm:$0xff] }
 0x17b   :  { %3527 = vst [vmem:[#allocation18_spill] sm:$0xff] %v2772_v23  ;;  %v2809_v32 = vmul.f32 %v1285_v45, %v2652_v13  ;;  %v2821_v9 = vmul.f32 %v1287_v36, %v2652_v13 }
 0x17c   :  { %3530 = vst [vmem:[#allocation20_spill] sm:$0xff] %v2787_v15  ;;  %3531 = vst [vmem:[#allocation38_spill] sm:$0xff] %v2792_v57  ;;  %v1286_v57 = vld [vmem:[%s3385_s0 + $0x240] sm:$0xff]  ;;  %v1289_v15 = vld [vmem:[%s3385_s0 + $0x258] sm:$0xff] }
 0x17d   :  { %3532 = vst [vmem:[#allocation21_spill] sm:$0xff] %v2797_v30  ;;  %3534 = vst [vmem:[#allocation39_spill] sm:$0xff] %v2809_v32  ;;  %v2815_v38 = vmul.f32 %v1286_v57, %v2652_v13  ;;  %v1288_v30 = vld [vmem:[%s3385_s0 + $0x250] sm:$0xff]  ;;  %v2833_v57 = vmul.f32 %v1289_v15, %v2652_v13  ;;  %v888_v32 = vpop.permute.xlu0 %887  ;;  %v1292_v15 = vld [vmem:[%s3385_s0 + $0x2a8] sm:$0xff] }
 0x17e   :  { %3536 = vst [vmem:[#allocation23_spill] sm:$0xff] %v2821_v9  ;;  %v2827_v45 = vmul.f32 %v1288_v30, %v2652_v13  ;;  %v2841_v9 = vpop.permute.xlu1 %777  ;;  %v1291_v30 = vld [vmem:[%s3385_s0 + $0x2a0] sm:$0xff]  ;;  %v962_v23 = vadd.f32 %v888_v32, %v2373_v24  ;;  %v965_v41 = vadd.f32 %v888_v32, %v2390_v48  ;;  %v1297_v24 = vld [vmem:[%s3385_s0 + $0x2d0] sm:$0xff]  ;;  %v1298_v48 = vld [vmem:[%s3385_s0 + $0x2d8] sm:$0xff] }
 0x17f   :  { %3535 = vst [vmem:[#allocation25_spill] sm:$0xff] %v2815_v38  ;;  %3538 = vst [vmem:[#allocation27_spill] sm:$0xff] %v2833_v57  ;;  %v1290_v38 = vld [vmem:[%s3385_s0 + $0x260] sm:$0xff]  ;;  %v2851_v57 = vmul.f32 %v1292_v15, %v768_v1  ;;  %v963_v15 = vadd.f32 %v888_v32, %v2378_v58  ;;  %v2895_v58 = vmul.f32 %v1297_v24, %v768_v1 }
 0x180   :  { %3537 = vst [vmem:[#allocation30_spill] sm:$0xff] %v2827_v45  ;;  %v2839_v36 = vmul.f32 %v1290_v38, %v2652_v13  ;;  %v2846_v45 = vmul.f32 %v1291_v30, %v768_v1  ;;  %v1293_v13 = vld [vmem:[%s3385_s0 + $0x2b0] sm:$0xff]  ;;  %v960_v30 = vadd.f32 %v888_v32, %v2363_v14  ;;  %1067 = vst [vmem:[%s3388_s3 + $0x10] sm:$0xff] %v962_v23  ;;  %v1296_v14 = vld [vmem:[%s3385_s0 + $0x2c8] sm:$0xff] }
 0x181   :  { %3541 = vst [vmem:[#allocation40_spill] sm:$0xff] %v2851_v57  ;;  %v2856_v38 = vmul.f32 %v1293_v13, %v768_v1  ;;  %v964_v57 = vadd.f32 %v888_v32, %v2385_v10  ;;  %v966_v13 = vadd.f32 %v888_v32, %v2395_v26  ;;  %1068 = vst [vmem:[%s3388_s3 + $0x18] sm:$0xff] %v963_v15  ;;  %v1299_v23 = vld [vmem:[%s3385_s0 + $0x2e0] sm:$0xff] }
 0x182   :  { %3539 = vst [vmem:[#allocation28_spill] sm:$0xff] %v2839_v36  ;;  %3540 = vst [vmem:[#allocation29_spill] sm:$0xff] %v2846_v45  ;;  %v1294_v36 = vld [vmem:[%s3385_s0 + $0x2b8] sm:$0xff]  ;;  %v961_v45 = vadd.f32 %v888_v32, %v2368_v46  ;;  %v2890_v46 = vmul.f32 %v1296_v14, %v768_v1  ;;  %v893_v10 = vpop.permute.xlu1 %892  ;;  %v2901_v26 = vmul.f32 %v1298_v48, %v2760_v11 }
 0x183   :  { %3542 = vst [vmem:[#allocation31_spill] sm:$0xff] %v2856_v38  ;;  %v2861_v16 = vmul.f32 %v1294_v36, %v768_v1  ;;  %v1295_v38 = vld [vmem:[%s3385_s0 + $0x2c0] sm:$0xff]  ;;  %1065 = vst [vmem:[%s3388_s3] sm:$0xff] %v960_v30  ;;  %v2907_v32 = vmul.f32 %v1299_v23, %v2760_v11  ;;  %v969_v30 = vadd.f32 %v893_v10, %v2410_v0 }
 0x184   :  { %v2873_v36 = vmul.f32 %v1295_v38, %v768_v1  ;;  %1066 = vst [vmem:[%s3388_s3 + $0x8] sm:$0xff] %v961_v45  ;;  %1069 = vst [vmem:[%s3388_s3 + $0x20] sm:$0xff] %v964_v57  ;;  %v898_v1 = vpop.permute.xlu0 %897  ;;  %v967_v45 = vadd.f32 %v893_v10, %v2400_v62  ;;  %v968_v38 = vadd.f32 %v893_v10, %v2405_v20 }
 0x185   :  { %1070 = vst [vmem:[%s3388_s3 + $0x28] sm:$0xff] %v965_v41  ;;  %1071 = vst.msk [vmem:[%s3388_s3 + $0x30] sm:$0xff] %vm124_vm0, %v966_v13  ;;  %v970_v15 = vadd.f32 %v893_v10, %v2415_v22  ;;  %v974_v57 = vadd.f32 %v898_v1, %v2435_v4  ;;  %v975_v14 = vadd.f32 %v898_v1, %v2440_v63  ;;  %v1300_v4 = vld [vmem:[%s3385_s0 + $0x2e8] sm:$0xff] }
 0x186   :  { %v976_v41 = vadd.f32 %v898_v1, %v2445_v28  ;;  %v977_v24 = vadd.f32 %v898_v1, %v2450_v34  ;;  %v978_v48 = vadd.f32 %v898_v1, %v2455_v25  ;;  %v979_v13 = vadd.f32 %v898_v1, %v2460_v6  ;;  %1072 = vst [vmem:[%s3388_s3 + $0x38] sm:$0xff] %v967_v45  ;;  %v1301_v28 = vld [vmem:[%s3385_s0 + $0x2f0] sm:$0xff] }
 0x187   :  { %v980_v62 = vadd.f32 %v898_v1, %v2467_v3  ;;  %v971_v20 = vadd.f32 %v893_v10, %v2420_v29  ;;  %1073 = vst [vmem:[%s3388_s3 + $0x40] sm:$0xff] %v968_v38  ;;  %1074 = vst [vmem:[%s3388_s3 + $0x48] sm:$0xff] %v969_v30  ;;  %v972_v0 = vadd.f32 %v893_v10, %v2425_v49  ;;  %v903_v29 = vpop.permute.xlu1 %902 }
 0x188   :  { %1075 = vst [vmem:[%s3388_s3 + $0x50] sm:$0xff] %v970_v15  ;;  %1079 = vst [vmem:[%s3388_s3 + $0x70] sm:$0xff] %v974_v57  ;;  %v973_v22 = vadd.f32 %v893_v10, %v2430_v51  ;;  %v2961_v63 = vmul.f32 %v1300_v4, %v2760_v11  ;;  %v2967_v34 = vmul.f32 %v1301_v28, %v2760_v11  ;;  %v908_v49 = vpop.permute.xlu0 %907  ;;  %v3548_v4 = vld [vmem:[#allocation12_spill] sm:$0xff] }
 0x189   :  { %1080 = vst [vmem:[%s3388_s3 + $0x78] sm:$0xff] %v975_v14  ;;  %1081 = vst [vmem:[%s3388_s3 + $0x80] sm:$0xff] %v976_v41  ;;  %v981_v51 = vadd.f32 %v903_v29, %v2472_v61  ;;  %v982_v25 = vadd.f32 %v903_v29, %v2477_v31  ;;  %v983_v6 = vadd.f32 %v903_v29, %v2482_v2 }
 0x18a   :  { %1082 = vst [vmem:[%s3388_s3 + $0x88] sm:$0xff] %v977_v24  ;;  %1083 = vst [vmem:[%s3388_s3 + $0x90] sm:$0xff] %v978_v48  ;;  %v984_v3 = vadd.f32 %v903_v29, %v2489_v59  ;;  %v988_v10 = vadd.f32 %v908_v49, %v2510_v56  ;;  %v989_v23 = vadd.f32 %v908_v49, %v2516_v12  ;;  %v3544_v24 = vld [vmem:[#allocation24_spill] sm:$0xff] }
 0x18b   :  { %1084 = vst [vmem:[%s3388_s3 + $0x98] sm:$0xff] %v979_v13  ;;  %1085 = vst.msk [vmem:[%s3388_s3 + $0xa0] sm:$0xff] %vm124_vm0, %v980_v62  ;;  %v990_v1 = vadd.f32 %v908_v49, %v2522_v19  ;;  %v991_v45 = vadd.f32 %v908_v49, %v2528_v50  ;;  %v992_v61 = vadd.f32 %v908_v49, %v2534_v42  ;;  %v913_v12 = vpop.permute.xlu1 %912  ;;  %v1302_v19 = vld [vmem:[%s3385_s0 + $0x2f8] sm:$0xff]  ;;  %v1303_v42 = vld [vmem:[%s3385_s0 + $0x300] sm:$0xff] }
 0x18c   :  { %1076 = vst [vmem:[%s3388_s3 + $0x58] sm:$0xff] %v971_v20  ;;  %1077 = vst [vmem:[%s3388_s3 + $0x60] sm:$0xff] %v972_v0  ;;  %v993_v31 = vadd.f32 %v908_v49, %v2540_v18  ;;  %v994_v2 = vadd.f32 %v908_v49, %v2546_v39  ;;  %v985_v59 = vadd.f32 %v903_v29, %v2494_v17  ;;  %v3545_v13 = vld [vmem:[#allocation7_spill] sm:$0xff]  ;;  %v3549_v49 = vld [vmem:[#allocation13_spill] sm:$0xff] }
 0x18d   :  { %1078 = vst.msk [vmem:[%s3388_s3 + $0x68] sm:$0xff] %vm124_vm0, %v973_v22  ;;  %1086 = vst [vmem:[%s3388_s3 + $0xa8] sm:$0xff] %v981_v51  ;;  %v986_v17 = vadd.f32 %v903_v29, %v2499_v35  ;;  %v987_v56 = vadd.f32 %v903_v29, %v2504_v27  ;;  %v3031_v50 = vmul.f32 %v1302_v19, %v2760_v11  ;;  %v918_v35 = vpop.permute.xlu0 %917  ;;  %v3546_v20 = vld [vmem:[#allocation11_spill] sm:$0xff]  ;;  %v3547_v22 = vld [vmem:[#allocation26_spill] sm:$0xff] }
 0x18e   :  { %1087 = vst [vmem:[%s3388_s3 + $0xb0] sm:$0xff] %v982_v25  ;;  %1088 = vst [vmem:[%s3388_s3 + $0xb8] sm:$0xff] %v983_v6  ;;  %v3037_v18 = vmul.f32 %v1303_v42, %v2760_v11  ;;  %v995_v27 = vadd.f32 %v913_v12, %v2552_v21  ;;  %v996_v39 = vadd.f32 %v913_v12, %v2560_v44  ;;  %v3551_v6 = vld [vmem:[#allocation35_spill] sm:$0xff] }
 0x18f   :  { %1089 = vst [vmem:[%s3388_s3 + $0xc0] sm:$0xff] %v984_v3  ;;  %1093 = vst [vmem:[%s3388_s3 + $0xe0] sm:$0xff] %v988_v10  ;;  %v997_v38 = vadd.f32 %v913_v12, %v2566_v7  ;;  %v998_v30 = vadd.f32 %v913_v12, %v2572_v52  ;;  %v1002_v15 = vadd.f32 %v918_v35, %v2596_v33  ;;  %v3552_v10 = vld [vmem:[#allocation18_spill] sm:$0xff] }
 0x190   :  { %1094 = vst [vmem:[%s3388_s3 + $0xe8] sm:$0xff] %v989_v23  ;;  %1095 = vst [vmem:[%s3388_s3 + $0xf0] sm:$0xff] %v990_v1  ;;  %v1003_v57 = vadd.f32 %v918_v35, %v2602_v8  ;;  %v1004_v14 = vadd.f32 %v918_v35, %v2608_v47  ;;  %v1005_v41 = vadd.f32 %v918_v35, %v2614_v40  ;;  %v923_v8 = vpop.permute.xlu1 %922  ;;  %v1304_v47 = vld [vmem:[%s3385_s0 + $0x310] sm:$0xff] }
 0x191   :  { %1096 = vst [vmem:[%s3388_s3 + $0xf8] sm:$0xff] %v991_v45  ;;  %1097 = vst [vmem:[%s3388_s3 + $0x100] sm:$0xff] %v992_v61  ;;  %v1006_v21 = vadd.f32 %v918_v35, %v2620_v55  ;;  %v1007_v44 = vadd.f32 %v918_v35, %v2626_v43  ;;  %v1008_v7 = vadd.f32 %v918_v35, %v2650_v60  ;;  %v1305_v55 = vld [vmem:[%s3385_s0 + $0x308] sm:$0xff]  ;;  %v3543_v60 = vld [vmem:[#allocation22_spill] sm:$0xff] }
 0x192   :  { %1098 = vst [vmem:[%s3388_s3 + $0x108] sm:$0xff] %v993_v31  ;;  %1099 = vst.msk [vmem:[%s3388_s3 + $0x110] sm:$0xff] %vm124_vm0, %v994_v2  ;;  %v999_v52 = vadd.f32 %v913_v12, %v2578_v54  ;;  %v1000_v54 = vadd.f32 %v913_v12, %v2584_v53  ;;  %v1001_v33 = vadd.f32 %v913_v12, %v2590_v37  ;;  %v928_v53 = vpop.permute.xlu0 %927  ;;  %v3553_v1 = vld [vmem:[#allocation8_spill] sm:$0xff]  ;;  %v3554_v61 = vld [vmem:[#allocation9_spill] sm:$0xff] }
 0x193   :  { %1090 = vst [vmem:[%s3388_s3 + $0xc8] sm:$0xff] %v985_v59  ;;  %1091 = vst [vmem:[%s3388_s3 + $0xd0] sm:$0xff] %v986_v17  ;;  %v3101_v40 = vmul.f32 %v1304_v47, %v2841_v9  ;;  %v3107_v43 = vmul.f32 %v1305_v55, %v2760_v11  ;;  %v1009_v37 = vadd.f32 %v923_v8, %v2682_v5  ;;  %v3550_v5 = vld [vmem:[#allocation32_spill] sm:$0xff]  ;;  %v3555_v2 = vld [vmem:[#allocation10_spill] sm:$0xff] }
 0x194   :  { %1092 = vst.msk [vmem:[%s3388_s3 + $0xd8] sm:$0xff] %vm124_vm0, %v987_v56  ;;  %1100 = vst [vmem:[%s3388_s3 + $0x118] sm:$0xff] %v995_v27  ;;  %v1010_v11 = vadd.f32 %v923_v8, %v3543_v60  ;;  %v1011_v48 = vadd.f32 %v923_v8, %v3544_v24  ;;  %v1012_v62 = vadd.f32 %v923_v8, %v3545_v13  ;;  %v1306_v17 = vld [vmem:[%s3385_s0 + $0x318] sm:$0xff]  ;;  %v1307_v12 = vld [vmem:[%s3385_s0 + $0x320] sm:$0xff]  ;;  %v933_v42 = vpop.permute.xlu1 %932 }
 0x195   :  { %1101 = vst [vmem:[%s3388_s3 + $0x120] sm:$0xff] %v996_v39  ;;  %1102 = vst [vmem:[%s3388_s3 + $0x128] sm:$0xff] %v997_v38  ;;  %v1016_v0 = vadd.f32 %v928_v53, %v3546_v20  ;;  %v1017_v29 = vadd.f32 %v928_v53, %v3547_v22  ;;  %v1018_v28 = vadd.f32 %v928_v53, %v3548_v4  ;;  %v3556_v27 = vld [vmem:[#allocation15_spill] sm:$0xff]  ;;  %v3557_v38 = vld [vmem:[#allocation2_spill] sm:$0xff] }
 0x196   :  { %1103 = vst [vmem:[%s3388_s3 + $0x130] sm:$0xff] %v998_v30  ;;  %1107 = vst [vmem:[%s3388_s3 + $0x150] sm:$0xff] %v1002_v15  ;;  %v1019_v51 = vadd.f32 %v928_v53, %v3549_v49  ;;  %v1020_v25 = vadd.f32 %v928_v53, %v3550_v5  ;;  %v1021_v3 = vadd.f32 %v928_v53, %v3551_v6  ;;  %v938_v35 = vpop.permute.xlu0 %937  ;;  %v3558_v15 = vld [vmem:[#allocation3_spill] sm:$0xff]  ;;  %v3564_v55 = vld [vmem:[#allocation30_spill] sm:$0xff] }
 0x197   :  { %1108 = vst [vmem:[%s3388_s3 + $0x158] sm:$0xff] %v1003_v57  ;;  %1109 = vst [vmem:[%s3388_s3 + $0x160] sm:$0xff] %v1004_v14  ;;  %v1022_v23 = vadd.f32 %v928_v53, %v3552_v10  ;;  %v1013_v45 = vadd.f32 %v923_v8, %v3553_v1  ;;  %v1014_v31 = vadd.f32 %v923_v8, %v3554_v61  ;;  %v3559_v14 = vld [vmem:[#allocation4_spill] sm:$0xff] }
 0x198   :  { %1110 = vst [vmem:[%s3388_s3 + $0x168] sm:$0xff] %v1005_v41  ;;  %1111 = vst [vmem:[%s3388_s3 + $0x170] sm:$0xff] %v1006_v21  ;;  %v1015_v59 = vadd.f32 %v923_v8, %v3555_v2  ;;  %v3171_v56 = vmul.f32 %v1306_v17, %v2841_v9  ;;  %v3177_v19 = vmul.f32 %v1307_v12, %v2841_v9  ;;  %v3560_v21 = vld [vmem:[#allocation37_spill] sm:$0xff]  ;;  %v3563_v8 = vld [vmem:[#allocation23_spill] sm:$0xff] }
 0x199   :  { %1112 = vst [vmem:[%s3388_s3 + $0x178] sm:$0xff] %v1007_v44  ;;  %1113 = vst.msk [vmem:[%s3388_s3 + $0x180] sm:$0xff] %vm124_vm0, %v1008_v7  ;;  %v1023_v39 = vadd.f32 %v933_v42, %v3556_v27  ;;  %v1024_v30 = vadd.f32 %v933_v42, %v3557_v38  ;;  %v1025_v57 = vadd.f32 %v933_v42, %v3558_v15  ;;  %v3561_v7 = vld [vmem:[#allocation39_spill] sm:$0xff] }
 0x19a   :  { %1104 = vst [vmem:[%s3388_s3 + $0x138] sm:$0xff] %v999_v52  ;;  %1105 = vst [vmem:[%s3388_s3 + $0x140] sm:$0xff] %v1000_v54  ;;  %v1026_v41 = vadd.f32 %v933_v42, %v3559_v14  ;;  %v1030_v44 = vadd.f32 %v938_v35, %v3560_v21  ;;  %v1031_v52 = vadd.f32 %v938_v35, %v3561_v7  ;;  %v3562_v54 = vld [vmem:[#allocation25_spill] sm:$0xff]  ;;  %v948_v5 = vpop.permute.xlu0 %947  ;;  %v3576_v12 = vld [vmem:[#allocation31_spill] sm:$0xff] }
 0x19b   :  { %1106 = vst.msk [vmem:[%s3388_s3 + $0x148] sm:$0xff] %vm124_vm0, %v1001_v33  ;;  %1114 = vst [vmem:[%s3388_s3 + $0x188] sm:$0xff] %v1009_v37  ;;  %v1032_v33 = vadd.f32 %v938_v35, %v3562_v54  ;;  %v1033_v47 = vadd.f32 %v938_v35, %v3563_v8  ;;  %v1034_v53 = vadd.f32 %v938_v35, %v3564_v55  ;;  %v3565_v37 = vld [vmem:[#allocation27_spill] sm:$0xff] }
 0x19c   :  { %1115 = vst [vmem:[%s3388_s3 + $0x190] sm:$0xff] %v1010_v11  ;;  %1116 = vst [vmem:[%s3388_s3 + $0x198] sm:$0xff] %v1011_v48  ;;  %v1035_v60 = vadd.f32 %v938_v35, %v3565_v37  ;;  %v3566_v11 = vld [vmem:[#allocation28_spill] sm:$0xff]  ;;  %v3567_v48 = vld [vmem:[#allocation19_spill] sm:$0xff]  ;;  %v1048_v27 = vadd.f32 %v948_v5, %v2873_v36  ;;  %v1050_v38 = vadd.f32 %v948_v5, %v2895_v58 }
 0x19d   :  { %1117 = vst [vmem:[%s3388_s3 + $0x1a0] sm:$0xff] %v1012_v62  ;;  %1121 = vst [vmem:[%s3388_s3 + $0x1c0] sm:$0xff] %v1016_v0  ;;  %v1036_v24 = vadd.f32 %v938_v35, %v3566_v11  ;;  %v1027_v13 = vadd.f32 %v933_v42, %v3567_v48  ;;  %v1308_v62 = vld [vmem:[%s3385_s0 + $0x328] sm:$0xff]  ;;  %v1309_v0 = vld [vmem:[%s3385_s0 + $0x330] sm:$0xff]  ;;  %v1047_v35 = vadd.f32 %v948_v5, %v2861_v16 }
 0x19e   :  { %1122 = vst [vmem:[%s3388_s3 + $0x1c8] sm:$0xff] %v1017_v29  ;;  %1123 = vst [vmem:[%s3388_s3 + $0x1d0] sm:$0xff] %v1018_v28  ;;  %v881_v20 = vmul.f32 %v1308_v62, %v2841_v9  ;;  %v882_v22 = vmul.f32 %v1309_v0, %v2841_v9  ;;  %v3568_v29 = vld [vmem:[#allocation5_spill] sm:$0xff]  ;;  %v3569_v28 = vld [vmem:[#allocation6_spill] sm:$0xff]  ;;  %v958_v7 = vpop.permute.xlu0 %957 }
 0x19f   :  { %1124 = vst [vmem:[%s3388_s3 + $0x1d8] sm:$0xff] %v1019_v51  ;;  %1125 = vst [vmem:[%s3388_s3 + $0x1e0] sm:$0xff] %v1020_v25  ;;  %v1028_v4 = vadd.f32 %v933_v42, %v3568_v29  ;;  %v1029_v49 = vadd.f32 %v933_v42, %v3569_v28  ;;  %v943_v51 = vpop.permute.xlu1 %942  ;;  %v3570_v25 = vld [vmem:[#allocation33_spill] sm:$0xff]  ;;  %v1046_v42 = vadd.f32 %v948_v5, %v3576_v12 }
 0x1a0   :  { %1126 = vst [vmem:[%s3388_s3 + $0x1e8] sm:$0xff] %v1021_v3  ;;  %1127 = vst.msk [vmem:[%s3388_s3 + $0x1f0] sm:$0xff] %vm124_vm0, %v1022_v23  ;;  %v1037_v6 = vadd.f32 %v943_v51, %v3570_v25  ;;  %v3571_v3 = vld [vmem:[#allocation14_spill] sm:$0xff]  ;;  %v3572_v23 = vld [vmem:[#allocation16_spill] sm:$0xff]  ;;  %v1058_v8 = vadd.f32 %v958_v7, %v3101_v40  ;;  %v1060_v55 = vadd.f32 %v958_v7, %v3177_v19 }
 0x1a1   :  { %1118 = vst [vmem:[%s3388_s3 + $0x1a8] sm:$0xff] %v1013_v45  ;;  %1119 = vst [vmem:[%s3388_s3 + $0x1b0] sm:$0xff] %v1014_v31  ;;  %v1038_v10 = vadd.f32 %v943_v51, %v3571_v3  ;;  %v1039_v1 = vadd.f32 %v943_v51, %v3572_v23  ;;  %v3573_v45 = vld [vmem:[#allocation17_spill] sm:$0xff] }
 0x1a2   :  { %1120 = vst.msk [vmem:[%s3388_s3 + $0x1b8] sm:$0xff] %vm124_vm0, %v1015_v59  ;;  %1128 = vst [vmem:[%s3388_s3 + $0x1f8] sm:$0xff] %v1023_v39  ;;  %v1040_v61 = vadd.f32 %v943_v51, %v3573_v45  ;;  %v3574_v31 = vld [vmem:[#allocation29_spill] sm:$0xff]  ;;  %v3575_v59 = vld [vmem:[#allocation40_spill] sm:$0xff]  ;;  %v1049_v39 = vadd.f32 %v948_v5, %v2890_v46 }
 0x1a3   :  { %1129 = vst [vmem:[%s3388_s3 + $0x200] sm:$0xff] %v1024_v30  ;;  %1130 = vst [vmem:[%s3388_s3 + $0x208] sm:$0xff] %v1025_v57  ;;  %v1044_v2 = vadd.f32 %v948_v5, %v3574_v31  ;;  %v1045_v17 = vadd.f32 %v948_v5, %v3575_v59  ;;  %v3577_v30 = vld [vmem:[#allocation20_spill] sm:$0xff]  ;;  %v1310_v16 = vld [vmem:[%s3385_s0 + $0x338] sm:$0xff] }
 0x1a4   :  { %1131 = vst [vmem:[%s3388_s3 + $0x210] sm:$0xff] %v1026_v41  ;;  %1135 = vst [vmem:[%s3388_s3 + $0x230] sm:$0xff] %v1030_v44  ;;  %v1041_v15 = vadd.f32 %v943_v51, %v3577_v30  ;;  %v883_v36 = vmul.f32 %v1310_v16, %v2841_v9  ;;  %v1311_v46 = vld [vmem:[%s3385_s0 + $0x340] sm:$0xff]  ;;  %v3579_v41 = vld [vmem:[#allocation21_spill] sm:$0xff]  ;;  %v953_v44 = vpop.permute.xlu1 %952 }
 0x1a5   :  { %1136 = vst [vmem:[%s3388_s3 + $0x238] sm:$0xff] %v1031_v52  ;;  %1137 = vst [vmem:[%s3388_s3 + $0x240] sm:$0xff] %v1032_v33  ;;  %v884_v58 = vmul.f32 %v1311_v46, %v2841_v9  ;;  %v3578_v57 = vld [vmem:[#allocation38_spill] sm:$0xff]  ;;  %v1043_v21 = vadd.f32 %v943_v51, %v3579_v41  ;;  %v1051_v9 = vadd.f32 %v953_v44, %v2901_v26 }
 0x1a6   :  { %1138 = vst [vmem:[%s3388_s3 + $0x248] sm:$0xff] %v1033_v47  ;;  %1139 = vst [vmem:[%s3388_s3 + $0x250] sm:$0xff] %v1034_v53  ;;  %v1042_v14 = vadd.f32 %v943_v51, %v3578_v57  ;;  %v1052_v52 = vadd.f32 %v953_v44, %v2907_v32  ;;  %v1053_v54 = vadd.f32 %v953_v44, %v2961_v63 }
 0x1a7   :  { %1140 = vst [vmem:[%s3388_s3 + $0x258] sm:$0xff] %v1035_v60  ;;  %1141 = vst.msk [vmem:[%s3388_s3 + $0x260] sm:$0xff] %vm124_vm0, %v1036_v24  ;;  %v1054_v33 = vadd.f32 %v953_v44, %v2967_v34  ;;  %v1059_v47 = vadd.f32 %v958_v7, %v3171_v56  ;;  %v1061_v53 = vadd.f32 %v958_v7, %v881_v20 }
 0x1a8   :  { %1132 = vst [vmem:[%s3388_s3 + $0x218] sm:$0xff] %v1027_v13  ;;  %1133 = vst [vmem:[%s3388_s3 + $0x220] sm:$0xff] %v1028_v4  ;;  %v1062_v26 = vadd.f32 %v958_v7, %v882_v22  ;;  %v1063_v32 = vadd.f32 %v958_v7, %v883_v36  ;;  %v1064_v63 = vadd.f32 %v958_v7, %v884_v58 }
 0x1a9   :  { %1134 = vst.msk [vmem:[%s3388_s3 + $0x228] sm:$0xff] %vm124_vm0, %v1029_v49  ;;  %1142 = vst [vmem:[%s3388_s3 + $0x268] sm:$0xff] %v1037_v6  ;;  %v1055_v34 = vadd.f32 %v953_v44, %v3031_v50  ;;  %v1056_v50 = vadd.f32 %v953_v44, %v3037_v18  ;;  %v1057_v40 = vadd.f32 %v953_v44, %v3107_v43 }
 0x1aa   :  { %1143 = vst [vmem:[%s3388_s3 + $0x270] sm:$0xff] %v1038_v10  ;;  %1144 = vst [vmem:[%s3388_s3 + $0x278] sm:$0xff] %v1039_v1 }
 0x1ab   :  { %1145 = vst [vmem:[%s3388_s3 + $0x280] sm:$0xff] %v1040_v61  ;;  %1149 = vst [vmem:[%s3388_s3 + $0x2a0] sm:$0xff] %v1044_v2 }
 0x1ac   :  { %1150 = vst [vmem:[%s3388_s3 + $0x2a8] sm:$0xff] %v1045_v17  ;;  %1151 = vst [vmem:[%s3388_s3 + $0x2b0] sm:$0xff] %v1046_v42 }
 0x1ad   :  { %1152 = vst [vmem:[%s3388_s3 + $0x2b8] sm:$0xff] %v1047_v35  ;;  %1153 = vst [vmem:[%s3388_s3 + $0x2c0] sm:$0xff] %v1048_v27 }
 0x1ae   :  { %1154 = vst [vmem:[%s3388_s3 + $0x2c8] sm:$0xff] %v1049_v39  ;;  %1155 = vst.msk [vmem:[%s3388_s3 + $0x2d0] sm:$0xff] %vm124_vm0, %v1050_v38 }
 0x1af   :  { %1146 = vst [vmem:[%s3388_s3 + $0x288] sm:$0xff] %v1041_v15  ;;  %1147 = vst [vmem:[%s3388_s3 + $0x290] sm:$0xff] %v1042_v14 }
 0x1b0   :  { %1148 = vst.msk [vmem:[%s3388_s3 + $0x298] sm:$0xff] %vm124_vm0, %v1043_v21  ;;  %1156 = vst [vmem:[%s3388_s3 + $0x2d8] sm:$0xff] %v1051_v9 }
 0x1b1   :  { %1157 = vst [vmem:[%s3388_s3 + $0x2e0] sm:$0xff] %v1052_v52  ;;  %1158 = vst [vmem:[%s3388_s3 + $0x2e8] sm:$0xff] %v1053_v54 }
 0x1b2   :  { %1159 = vst [vmem:[%s3388_s3 + $0x2f0] sm:$0xff] %v1054_v33  ;;  %1163 = vst [vmem:[%s3388_s3 + $0x310] sm:$0xff] %v1058_v8 }
 0x1b3   :  { %1164 = vst [vmem:[%s3388_s3 + $0x318] sm:$0xff] %v1059_v47  ;;  %1165 = vst [vmem:[%s3388_s3 + $0x320] sm:$0xff] %v1060_v55 }
 0x1b4   :  { %1166 = vst [vmem:[%s3388_s3 + $0x328] sm:$0xff] %v1061_v53  ;;  %1167 = vst [vmem:[%s3388_s3 + $0x330] sm:$0xff] %v1062_v26 }
 0x1b5   :  { %1168 = vst [vmem:[%s3388_s3 + $0x338] sm:$0xff] %v1063_v32  ;;  %1169 = vst.msk [vmem:[%s3388_s3 + $0x340] sm:$0xff] %vm124_vm0, %v1064_v63 }
 0x1b6   :  { %1160 = vst [vmem:[%s3388_s3 + $0x2f8] sm:$0xff] %v1055_v34  ;;  %1161 = vst [vmem:[%s3388_s3 + $0x300] sm:$0xff] %v1056_v50 }
 0x1b7   :  { %1162 = vst.msk [vmem:[%s3388_s3 + $0x308] sm:$0xff] %vm124_vm0, %v1057_v40 }

</bundles_post_ra>
